<compile_context>
chip_gen: v5e
topology: v5e:2x2
jax: 0.10.0
libtpu: 0.0.40
codegen_flags: <defaults>
</compile_context>

<pallas_src>
import jax
import jax.numpy as jnp
from jax.experimental import pallas as pl
from jax.experimental.pallas import tpu as pltpu

CNN_OUTPUT_DEPTH = 15
EMBEDDING_SIZE = 15
HIDDEN_SIZE = 10
NUM_LAYERS = 2
NUM_TOKENS = 26 + 3  # 'a'..'z' + <START> + <END> + ' '


def _rup8(n):
    return -(-n // 8) * 8


H3 = 3 * HIDDEN_SIZE
# Fused layer-0 input weight rows: [W_ctx (C,3H); embed_w @ W_emb (V,3H); zero pad]
WF_ROWS = _rup8(CNN_OUTPUT_DEPTH + NUM_TOKENS)        # 48
ONE_HOT_W = WF_ROWS - CNN_OUTPUT_DEPTH                # 33 (>= NUM_TOKENS, extra cols 0)
# Row offsets inside the packed weight slab (all 8-aligned for the matrices).
OFF_WF = 0
OFF_WHH0 = OFF_WF + WF_ROWS                           # 48
OFF_WIH1 = OFF_WHH0 + _rup8(HIDDEN_SIZE)              # 64
OFF_WHH1 = OFF_WIH1 + _rup8(HIDDEN_SIZE)              # 80
OFF_AFFW = OFF_WHH1 + _rup8(HIDDEN_SIZE)              # 96
OFF_BIAS = OFF_AFFW + _rup8(HIDDEN_SIZE)              # 112
OFF_BIH0 = OFF_BIAS + 0
OFF_BHH0 = OFF_BIAS + 1
OFF_BIH1 = OFF_BIAS + 2
OFF_BHH1 = OFF_BIAS + 3
OFF_AFFB = OFF_BIAS + 4
SLAB_ROWS = _rup8(OFF_BIAS + 5)                       # 120


def decoder_kernel(tok_ref, ctx_ref, w_ref, logits_ref, hidden_ref,
                   gx0_ref, gx1_ref, h1hist_ref, h2hist_ref):
    H = HIDDEN_SIZE
    V = NUM_TOKENS
    TBp = tok_ref.shape[0]           # T * Bp (time-major, batch padded to 8)
    Bp = hidden_ref.shape[1]
    T = TBp // Bp

    # ---- static slices of the single packed weight slab (prologue only) ----
    wfused = w_ref[OFF_WF:OFF_WF + WF_ROWS, :H3]       # (48, 3H) incl. embedding fold
    whh0 = w_ref[OFF_WHH0:OFF_WHH0 + H, :H3]           # (H, 3H)
    wih1 = w_ref[OFF_WIH1:OFF_WIH1 + H, :H3]
    whh1 = w_ref[OFF_WHH1:OFF_WHH1 + H, :H3]
    affw = w_ref[OFF_AFFW:OFF_AFFW + H, :V]            # (H, V)
    bih0 = w_ref[OFF_BIH0:OFF_BIH0 + 1, :H3]
    bhh0 = w_ref[OFF_BHH0:OFF_BHH0 + 1, :H3]
    bih1 = w_ref[OFF_BIH1:OFF_BIH1 + 1, :H3]
    bhh1 = w_ref[OFF_BHH1:OFF_BHH1 + 1, :H3]
    affb = w_ref[OFF_AFFB:OFF_AFFB + 1, :V]

    # ---- embedding folded into layer-0 projection: [ctx | one_hot] @ W_fused ----
    tok = tok_ref[...]                                              # (TBp, 1) int32
    oh_iota = jax.lax.broadcasted_iota(jnp.int32, (TBp, ONE_HOT_W), 1)
    one_hot = (tok == oh_iota).astype(jnp.float32)                  # (TBp, 33)
    x = jnp.concatenate([ctx_ref[...], one_hot], axis=-1)           # (TBp, 48)
    gx0_ref[...] = jnp.dot(x, wfused,
                           preferred_element_type=jnp.float32) + bih0   # (TBp, 3H)

    def gru_cell(gx, h, whh, bhh):
        # gx already holds  x @ W_ih + b_ih  for the (r, z, n) gates.
        gh = jnp.dot(h, whh, preferred_element_type=jnp.float32) + bhh  # (Bp, 3H)
        rz = jax.nn.sigmoid(gx[:, :2 * H] + gh[:, :2 * H])              # fused r|z
        r = rz[:, :H]
        z = rz[:, H:]
        n = jnp.tanh(gx[:, 2 * H:3 * H] + r * gh[:, 2 * H:3 * H])
        return (1.0 - z) * n + z * h

    # ---- pass 1: layer-0 GRU over all T steps (unrolled, aligned slices) ----
    h1 = jnp.zeros((Bp, H), jnp.float32)
    for t in range(T):
        h1 = gru_cell(gx0_ref[t * Bp:(t + 1) * Bp, :], h1, whh0, bhh0)
        h1hist_ref[t * Bp:(t + 1) * Bp, :] = h1       # off the critical path

    # ---- layer-1 input projection for ALL steps: one batched matmul ----
    gx1_ref[...] = jnp.dot(h1hist_ref[...], wih1,
                           preferred_element_type=jnp.float32) + bih1   # (TBp, 3H)

    # ---- pass 2: layer-1 GRU over all T steps ----
    h2 = jnp.zeros((Bp, H), jnp.float32)
    for t in range(T):
        h2 = gru_cell(gx1_ref[t * Bp:(t + 1) * Bp, :], h2, whh1, bhh1)
        h2hist_ref[t * Bp:(t + 1) * Bp, :] = h2

    # ---- affine hoisted out of the recurrence: one matmul + one slab store ----
    logits_ref[...] = jnp.dot(h2hist_ref[...], affw,
                              preferred_element_type=jnp.float32) + affb
    hidden_ref[0, :, :] = h1
    hidden_ref[1, :, :] = h2


# ---------------- parameter setup (deterministic, PyTorch-shaped) ----------------
def init_params(key):
    H, E, C, V = HIDDEN_SIZE, EMBEDDING_SIZE, CNN_OUTPUT_DEPTH, NUM_TOKENS
    D0 = C + E
    ks = jax.random.split(key, 11)
    bound = 1.0 / (H ** 0.5)
    u = lambda k, s: jax.random.uniform(k, s, jnp.float32, -bound, bound)
    return dict(
        embed_w=jax.random.normal(ks[0], (V, E), jnp.float32),   # nn.Embedding
        w_ih_l0=u(ks[1], (3 * H, D0)), w_hh_l0=u(ks[2], (3 * H, H)),
        b_ih_l0=u(ks[3], (3 * H,)),    b_hh_l0=u(ks[4], (3 * H,)),
        w_ih_l1=u(ks[5], (3 * H, H)),  w_hh_l1=u(ks[6], (3 * H, H)),
        b_ih_l1=u(ks[7], (3 * H,)),    b_hh_l1=u(ks[8], (3 * H,)),
        affine_w=u(ks[9], (V, H)),     affine_b=u(ks[10], (V,)),
    )


@jax.jit
def decoder_forward(token, context, hidden, params):
    """token: (B, T) int32, context: (B, T, 15) f32; `hidden` ignored (matches PyTorch)."""
    del hidden  # self.gru(gru_input_vector) is called without `hidden` -> zero init
    B, T = token.shape
    H, V, C = HIDDEN_SIZE, NUM_TOKENS, CNN_OUTPUT_DEPTH
    Bp = _rup8(B)                 # pad batch to a full 8-sublane tile
    TBp = T * Bp

    # ---- packed weight slab (ONE VMEM input -> one DMA), gates in (r,z,n) order ----
    wih0 = params['w_ih_l0'].T                                   # (C+E, 3H)
    w_emb_proj = params['embed_w'] @ wih0[C:, :]                 # (V, 3H) embedding fold
    slab = jnp.zeros((SLAB_ROWS, H3), jnp.float32)
    slab = slab.at[OFF_WF:OFF_WF + C, :].set(wih0[:C, :])
    slab = slab.at[OFF_WF + C:OFF_WF + C + V, :].set(w_emb_proj)
    slab = slab.at[OFF_WHH0:OFF_WHH0 + H, :].set(params['w_hh_l0'].T)
    slab = slab.at[OFF_WIH1:OFF_WIH1 + H, :].set(params['w_ih_l1'].T)
    slab = slab.at[OFF_WHH1:OFF_WHH1 + H, :].set(params['w_hh_l1'].T)
    slab = slab.at[OFF_AFFW:OFF_AFFW + H, :V].set(params['affine_w'].T)
    slab = slab.at[OFF_BIH0, :].set(params['b_ih_l0'])
    slab = slab.at[OFF_BHH0, :].set(params['b_hh_l0'])
    slab = slab.at[OFF_BIH1, :].set(params['b_ih_l1'])
    slab = slab.at[OFF_BHH1, :].set(params['b_hh_l1'])
    slab = slab.at[OFF_AFFB, :V].set(params['affine_b'])

    # ---- time-major flatten with batch padded to Bp (done in XLA) ----
    tok_tm = jnp.zeros((T, Bp), jnp.int32).at[:, :B].set(token.T.astype(jnp.int32))
    ctx_tm = jnp.zeros((T, Bp, C), jnp.float32).at[:, :B, :].set(
        jnp.transpose(context, (1, 0, 2)).astype(jnp.float32))
    token_flat = tok_tm.reshape(TBp, 1)
    ctx_flat = ctx_tm.reshape(TBp, C)

    flops = (2 * TBp * (C + ONE_HOT_W) * H3            # layer-0 input projection
             + 2 * TBp * H * H3                        # layer-1 input projection
             + 2 * NUM_LAYERS * T * Bp * H * H3        # recurrent gate matmuls
             + 2 * TBp * H * V)                        # affine
    transcendentals = NUM_LAYERS * T * Bp * 3 * H
    bytes_accessed = 4 * (TBp * (1 + C + V) + SLAB_ROWS * H3 + NUM_LAYERS * Bp * H)

    vmem = pl.BlockSpec(memory_space=pltpu.MemorySpace.VMEM)
    logits_flat, h_n_full = pl.pallas_call(
        decoder_kernel,
        out_shape=(jax.ShapeDtypeStruct((TBp, V), jnp.float32),
                   jax.ShapeDtypeStruct((NUM_LAYERS, Bp, H), jnp.float32)),
        in_specs=[vmem, vmem, vmem],
        out_specs=(vmem, vmem),
        scratch_shapes=[pltpu.VMEM((TBp, H3), jnp.float32),   # gx layer-0
                        pltpu.VMEM((TBp, H3), jnp.float32),   # gx layer-1
                        pltpu.VMEM((TBp, H), jnp.float32),    # h1 history
                        pltpu.VMEM((TBp, H), jnp.float32)],   # h2 history
        cost_estimate=pl.CostEstimate(flops=flops,
                                      transcendentals=transcendentals,
                                      bytes_accessed=bytes_accessed),
    )(token_flat, ctx_flat, slab)

    # strip the batch padding, back to batch-first
    logits = jnp.transpose(logits_flat.reshape(T, Bp, V)[:, :B, :], (1, 0, 2))
    h_n = h_n_full[:, :B, :]
    return logits, h_n


# ---------------- pure-JAX reference (mirrors torch semantics) ----------------
def decoder_reference(token, context, params):
    H = HIDDEN_SIZE
    emb = params['embed_w'][token]                       # (B, T, E)
    x = jnp.concatenate([context, emb], axis=-1)
    B, T, _ = x.shape

    def gru_layer(xs, w_ih, w_hh, b_ih, b_hh):
        def cell(h, x_t):
            gi = x_t @ w_ih.T + b_ih
            gh = h @ w_hh.T + b_hh
            r = jax.nn.sigmoid(gi[:, :H] + gh[:, :H])
            z = jax.nn.sigmoid(gi[:, H:2 * H] + gh[:, H:2 * H])
            n = jnp.tanh(gi[:, 2 * H:] + r * gh[:, 2 * H:])
            h_new = (1 - z) * n + z * h
            return h_new, h_new
        h_f, outs = jax.lax.scan(cell, jnp.zeros((B, H), jnp.float32),
                                 jnp.transpose(xs, (1, 0, 2)))
        return jnp.transpose(outs, (1, 0, 2)), h_f

    o1, h1 = gru_layer(x, params['w_ih_l0'], params['w_hh_l0'],
                       params['b_ih_l0'], params['b_hh_l0'])
    o2, h2 = gru_layer(o1, params['w_ih_l1'], params['w_hh_l1'],
                       params['b_ih_l1'], params['b_hh_l1'])
    logits = o2 @ params['affine_w'].T + params['affine_b']
    return logits, jnp.stack([h1, h2], axis=0)


if __name__ == "__main__":
    key = jax.random.PRNGKey(0)
    kp, kt, kc = jax.random.split(key, 3)
    params = init_params(kp)

    B, T = 2, 8
    token = jax.random.randint(kt, (B, T), 0, NUM_TOKENS, dtype=jnp.int32)
    context = jax.random.normal(kc, (B, T, CNN_OUTPUT_DEPTH), jnp.float32)
    hidden_in = jnp.zeros((NUM_LAYERS, B, HIDDEN_SIZE), jnp.float32)

    logits, hidden = decoder_forward(token, context, hidden_in, params)
    (logits, hidden) = jax.block_until_ready((logits, hidden))

    ref_logits, ref_hidden = decoder_reference(token, context, params)
    assert logits.shape == (B, T, NUM_TOKENS)
    assert hidden.shape == (NUM_LAYERS, B, HIDDEN_SIZE)
    assert jnp.allclose(logits, ref_logits, atol=2e-3, rtol=2e-3)
    assert jnp.allclose(hidden, ref_hidden, atol=2e-3, rtol=2e-3)
    print("KERNEL_OK")
</pallas_src>

<mosaic_0001>
module attributes {stable_mosaic.version = 11 : i64} {
  func.func @decoder_kernel(%arg0: memref<64x1xi32, #tpu.memory_space<vmem>>, %arg1: memref<64x15xf32, #tpu.memory_space<vmem>>, %arg2: memref<120x30xf32, #tpu.memory_space<vmem>>, %arg3: memref<64x29xf32, #tpu.memory_space<vmem>>, %arg4: memref<2x8x10xf32, #tpu.memory_space<vmem>>, %arg5: memref<64x30xf32, #tpu.memory_space<vmem>>, %arg6: memref<64x30xf32, #tpu.memory_space<vmem>>, %arg7: memref<64x10xf32, #tpu.memory_space<vmem>>, %arg8: memref<64x10xf32, #tpu.memory_space<vmem>>) attributes {dimension_semantics = [], scalar_prefetch = 0 : i64, scratch_operands = 4 : i64, tpu.core_type = #tpu.core_type<tc>} {
    %c0 = arith.constant 0 : index
    %c0_0 = arith.constant 0 : index
    %0 = vector.load %arg2[%c0, %c0_0] : memref<120x30xf32, #tpu.memory_space<vmem>>, vector<48x30xf32>
    %c48 = arith.constant 48 : index
    %c0_1 = arith.constant 0 : index
    %1 = vector.load %arg2[%c48, %c0_1] : memref<120x30xf32, #tpu.memory_space<vmem>>, vector<10x30xf32>
    %c64 = arith.constant 64 : index
    %c0_2 = arith.constant 0 : index
    %2 = vector.load %arg2[%c64, %c0_2] : memref<120x30xf32, #tpu.memory_space<vmem>>, vector<10x30xf32>
    %c80 = arith.constant 80 : index
    %c0_3 = arith.constant 0 : index
    %3 = vector.load %arg2[%c80, %c0_3] : memref<120x30xf32, #tpu.memory_space<vmem>>, vector<10x30xf32>
    %c96 = arith.constant 96 : index
    %c0_4 = arith.constant 0 : index
    %4 = vector.load %arg2[%c96, %c0_4] : memref<120x30xf32, #tpu.memory_space<vmem>>, vector<10x29xf32>
    %c112 = arith.constant 112 : index
    %c0_5 = arith.constant 0 : index
    %5 = vector.load %arg2[%c112, %c0_5] : memref<120x30xf32, #tpu.memory_space<vmem>>, vector<1x30xf32>
    %c113 = arith.constant 113 : index
    %c0_6 = arith.constant 0 : index
    %6 = vector.load %arg2[%c113, %c0_6] : memref<120x30xf32, #tpu.memory_space<vmem>>, vector<1x30xf32>
    %c114 = arith.constant 114 : index
    %c0_7 = arith.constant 0 : index
    %7 = vector.load %arg2[%c114, %c0_7] : memref<120x30xf32, #tpu.memory_space<vmem>>, vector<1x30xf32>
    %c115 = arith.constant 115 : index
    %c0_8 = arith.constant 0 : index
    %8 = vector.load %arg2[%c115, %c0_8] : memref<120x30xf32, #tpu.memory_space<vmem>>, vector<1x30xf32>
    %c116 = arith.constant 116 : index
    %c0_9 = arith.constant 0 : index
    %9 = vector.load %arg2[%c116, %c0_9] : memref<120x30xf32, #tpu.memory_space<vmem>>, vector<1x29xf32>
    %c0_10 = arith.constant 0 : index
    %c0_11 = arith.constant 0 : index
    %10 = vector.load %arg0[%c0_10, %c0_11] : memref<64x1xi32, #tpu.memory_space<vmem>>, vector<64x1xi32>
    %11 = tpu.iota {dimensions = array<i32: 1>} : vector<64x33xi32>
    %12 = vector.broadcast %10 : vector<64x1xi32> to vector<64x33xi32>
    %13 = arith.cmpi eq, %12, %11 : vector<64x33xi32>
    %14 = arith.extui %13 : vector<64x33xi1> to vector<64x33xi32>
    %15 = arith.sitofp %14 : vector<64x33xi32> to vector<64x33xf32>
    %c0_12 = arith.constant 0 : index
    %c0_13 = arith.constant 0 : index
    %16 = vector.load %arg1[%c0_12, %c0_13] : memref<64x15xf32, #tpu.memory_space<vmem>>, vector<64x15xf32>
    %17 = tpu.concatenate %16, %15 in 1 : vector<64x15xf32>, vector<64x33xf32> -> vector<64x48xf32>
    %cst = arith.constant dense<0.000000e+00> : vector<64x30xf32>
    %18 = tpu.matmul %17, %0, %cst {dimension_numbers = #tpu.dot_dimension_numbers<[1], [0], [0], [1], [0, 0, 1, 1], [], []>} : vector<64x48xf32>, vector<48x30xf32>, vector<64x30xf32> -> vector<64x30xf32>
    %19 = vector.broadcast %5 : vector<1x30xf32> to vector<64x30xf32>
    %20 = arith.addf %18, %19 : vector<64x30xf32>
    %c0_14 = arith.constant 0 : index
    %c0_15 = arith.constant 0 : index
    %21 = vector.load %arg5[%c0_14, %c0_15] : memref<64x30xf32, #tpu.memory_space<vmem>>, vector<64x30xf32>
    tpu.vector_store %arg5[%c0_14, %c0_15], %20 {strides = array<i32>} : memref<64x30xf32, #tpu.memory_space<vmem>>, vector<64x30xf32>,
    %cst_16 = arith.constant 0.000000e+00 : f32
    %22 = vector.broadcast %cst_16 : f32 to vector<8x10xf32>
    %c0_17 = arith.constant 0 : index
    %c0_18 = arith.constant 0 : index
    %23 = vector.load %arg5[%c0_17, %c0_18] : memref<64x30xf32, #tpu.memory_space<vmem>>, vector<8x30xf32>
    %cst_19 = arith.constant dense<0.000000e+00> : vector<8x30xf32>
    %24 = tpu.matmul %22, %1, %cst_19 {dimension_numbers = #tpu.dot_dimension_numbers<[1], [0], [0], [1], [0, 0, 1, 1], [], []>} : vector<8x10xf32>, vector<10x30xf32>, vector<8x30xf32> -> vector<8x30xf32>
    %25 = vector.broadcast %6 : vector<1x30xf32> to vector<8x30xf32>
    %26 = arith.addf %24, %25 : vector<8x30xf32>
    %27 = vector.extract_strided_slice %23 {offsets = [0, 0], sizes = [8, 20], strides = [1, 1]} : vector<8x30xf32> to vector<8x20xf32>
    %28 = vector.extract_strided_slice %26 {offsets = [0, 0], sizes = [8, 20], strides = [1, 1]} : vector<8x30xf32> to vector<8x20xf32>
    %29 = arith.addf %27, %28 : vector<8x20xf32>
    %30 = arith.negf %29 : vector<8x20xf32>
    %31 = math.exp %30 : vector<8x20xf32>
    %cst_20 = arith.constant 1.000000e+00 : f32
    %32 = vector.broadcast %cst_20 : f32 to vector<8x20xf32>
    %33 = arith.addf %32, %31 : vector<8x20xf32>
    %34 = arith.divf %32, %33 : vector<8x20xf32>
    %35 = vector.extract_strided_slice %34 {offsets = [0, 0], sizes = [8, 10], strides = [1, 1]} : vector<8x20xf32> to vector<8x10xf32>
    %36 = vector.extract_strided_slice %34 {offsets = [0, 10], sizes = [8, 10], strides = [1, 1]} : vector<8x20xf32> to vector<8x10xf32>
    %37 = vector.extract_strided_slice %23 {offsets = [0, 20], sizes = [8, 10], strides = [1, 1]} : vector<8x30xf32> to vector<8x10xf32>
    %38 = vector.extract_strided_slice %26 {offsets = [0, 20], sizes = [8, 10], strides = [1, 1]} : vector<8x30xf32> to vector<8x10xf32>
    %39 = arith.mulf %35, %38 : vector<8x10xf32>
    %40 = arith.addf %37, %39 : vector<8x10xf32>
    %41 = math.tanh %40 : vector<8x10xf32>
    %cst_21 = arith.constant 1.000000e+00 : f32
    %42 = vector.broadcast %cst_21 : f32 to vector<8x10xf32>
    %43 = arith.subf %42, %36 : vector<8x10xf32>
    %44 = arith.mulf %43, %41 : vector<8x10xf32>
    %45 = arith.mulf %36, %22 : vector<8x10xf32>
    %46 = arith.addf %44, %45 : vector<8x10xf32>
    %c0_22 = arith.constant 0 : index
    %c0_23 = arith.constant 0 : index
    %47 = vector.load %arg7[%c0_22, %c0_23] : memref<64x10xf32, #tpu.memory_space<vmem>>, vector<8x10xf32>
    tpu.vector_store %arg7[%c0_22, %c0_23], %46 {strides = array<i32>} : memref<64x10xf32, #tpu.memory_space<vmem>>, vector<8x10xf32>,
    %c8 = arith.constant 8 : index
    %c0_24 = arith.constant 0 : index
    %48 = vector.load %arg5[%c8, %c0_24] : memref<64x30xf32, #tpu.memory_space<vmem>>, vector<8x30xf32>
    %cst_25 = arith.constant dense<0.000000e+00> : vector<8x30xf32>
    %49 = tpu.matmul %46, %1, %cst_25 {dimension_numbers = #tpu.dot_dimension_numbers<[1], [0], [0], [1], [0, 0, 1, 1], [], []>} : vector<8x10xf32>, vector<10x30xf32>, vector<8x30xf32> -> vector<8x30xf32>
    %50 = vector.broadcast %6 : vector<1x30xf32> to vector<8x30xf32>
    %51 = arith.addf %49, %50 : vector<8x30xf32>
    %52 = vector.extract_strided_slice %48 {offsets = [0, 0], sizes = [8, 20], strides = [1, 1]} : vector<8x30xf32> to vector<8x20xf32>
    %53 = vector.extract_strided_slice %51 {offsets = [0, 0], sizes = [8, 20], strides = [1, 1]} : vector<8x30xf32> to vector<8x20xf32>
    %54 = arith.addf %52, %53 : vector<8x20xf32>
    %55 = arith.negf %54 : vector<8x20xf32>
    %56 = math.exp %55 : vector<8x20xf32>
    %cst_26 = arith.constant 1.000000e+00 : f32
    %57 = vector.broadcast %cst_26 : f32 to vector<8x20xf32>
    %58 = arith.addf %57, %56 : vector<8x20xf32>
    %59 = arith.divf %57, %58 : vector<8x20xf32>
    %60 = vector.extract_strided_slice %59 {offsets = [0, 0], sizes = [8, 10], strides = [1, 1]} : vector<8x20xf32> to vector<8x10xf32>
    %61 = vector.extract_strided_slice %59 {offsets = [0, 10], sizes = [8, 10], strides = [1, 1]} : vector<8x20xf32> to vector<8x10xf32>
    %62 = vector.extract_strided_slice %48 {offsets = [0, 20], sizes = [8, 10], strides = [1, 1]} : vector<8x30xf32> to vector<8x10xf32>
    %63 = vector.extract_strided_slice %51 {offsets = [0, 20], sizes = [8, 10], strides = [1, 1]} : vector<8x30xf32> to vector<8x10xf32>
    %64 = arith.mulf %60, %63 : vector<8x10xf32>
    %65 = arith.addf %62, %64 : vector<8x10xf32>
    %66 = math.tanh %65 : vector<8x10xf32>
    %cst_27 = arith.constant 1.000000e+00 : f32
    %67 = vector.broadcast %cst_27 : f32 to vector<8x10xf32>
    %68 = arith.subf %67, %61 : vector<8x10xf32>
    %69 = arith.mulf %68, %66 : vector<8x10xf32>
    %70 = arith.mulf %61, %46 : vector<8x10xf32>
    %71 = arith.addf %69, %70 : vector<8x10xf32>
    %c8_28 = arith.constant 8 : index
    %c0_29 = arith.constant 0 : index
    %72 = vector.load %arg7[%c8_28, %c0_29] : memref<64x10xf32, #tpu.memory_space<vmem>>, vector<8x10xf32>
    tpu.vector_store %arg7[%c8_28, %c0_29], %71 {strides = array<i32>} : memref<64x10xf32, #tpu.memory_space<vmem>>, vector<8x10xf32>,
    %c16 = arith.constant 16 : index
    %c0_30 = arith.constant 0 : index
    %73 = vector.load %arg5[%c16, %c0_30] : memref<64x30xf32, #tpu.memory_space<vmem>>, vector<8x30xf32>
    %cst_31 = arith.constant dense<0.000000e+00> : vector<8x30xf32>
    %74 = tpu.matmul %71, %1, %cst_31 {dimension_numbers = #tpu.dot_dimension_numbers<[1], [0], [0], [1], [0, 0, 1, 1], [], []>} : vector<8x10xf32>, vector<10x30xf32>, vector<8x30xf32> -> vector<8x30xf32>
    %75 = vector.broadcast %6 : vector<1x30xf32> to vector<8x30xf32>
    %76 = arith.addf %74, %75 : vector<8x30xf32>
    %77 = vector.extract_strided_slice %73 {offsets = [0, 0], sizes = [8, 20], strides = [1, 1]} : vector<8x30xf32> to vector<8x20xf32>
    %78 = vector.extract_strided_slice %76 {offsets = [0, 0], sizes = [8, 20], strides = [1, 1]} : vector<8x30xf32> to vector<8x20xf32>
    %79 = arith.addf %77, %78 : vector<8x20xf32>
    %80 = arith.negf %79 : vector<8x20xf32>
    %81 = math.exp %80 : vector<8x20xf32>
    %cst_32 = arith.constant 1.000000e+00 : f32
    %82 = vector.broadcast %cst_32 : f32 to vector<8x20xf32>
    %83 = arith.addf %82, %81 : vector<8x20xf32>
    %84 = arith.divf %82, %83 : vector<8x20xf32>
    %85 = vector.extract_strided_slice %84 {offsets = [0, 0], sizes = [8, 10], strides = [1, 1]} : vector<8x20xf32> to vector<8x10xf32>
    %86 = vector.extract_strided_slice %84 {offsets = [0, 10], sizes = [8, 10], strides = [1, 1]} : vector<8x20xf32> to vector<8x10xf32>
    %87 = vector.extract_strided_slice %73 {offsets = [0, 20], sizes = [8, 10], strides = [1, 1]} : vector<8x30xf32> to vector<8x10xf32>
    %88 = vector.extract_strided_slice %76 {offsets = [0, 20], sizes = [8, 10], strides = [1, 1]} : vector<8x30xf32> to vector<8x10xf32>
    %89 = arith.mulf %85, %88 : vector<8x10xf32>
    %90 = arith.addf %87, %89 : vector<8x10xf32>
    %91 = math.tanh %90 : vector<8x10xf32>
    %cst_33 = arith.constant 1.000000e+00 : f32
    %92 = vector.broadcast %cst_33 : f32 to vector<8x10xf32>
    %93 = arith.subf %92, %86 : vector<8x10xf32>
    %94 = arith.mulf %93, %91 : vector<8x10xf32>
    %95 = arith.mulf %86, %71 : vector<8x10xf32>
    %96 = arith.addf %94, %95 : vector<8x10xf32>
    %c16_34 = arith.constant 16 : index
    %c0_35 = arith.constant 0 : index
    %97 = vector.load %arg7[%c16_34, %c0_35] : memref<64x10xf32, #tpu.memory_space<vmem>>, vector<8x10xf32>
    tpu.vector_store %arg7[%c16_34, %c0_35], %96 {strides = array<i32>} : memref<64x10xf32, #tpu.memory_space<vmem>>, vector<8x10xf32>,
    %c24 = arith.constant 24 : index
    %c0_36 = arith.constant 0 : index
    %98 = vector.load %arg5[%c24, %c0_36] : memref<64x30xf32, #tpu.memory_space<vmem>>, vector<8x30xf32>
    %cst_37 = arith.constant dense<0.000000e+00> : vector<8x30xf32>
    %99 = tpu.matmul %96, %1, %cst_37 {dimension_numbers = #tpu.dot_dimension_numbers<[1], [0], [0], [1], [0, 0, 1, 1], [], []>} : vector<8x10xf32>, vector<10x30xf32>, vector<8x30xf32> -> vector<8x30xf32>
    %100 = vector.broadcast %6 : vector<1x30xf32> to vector<8x30xf32>
    %101 = arith.addf %99, %100 : vector<8x30xf32>
    %102 = vector.extract_strided_slice %98 {offsets = [0, 0], sizes = [8, 20], strides = [1, 1]} : vector<8x30xf32> to vector<8x20xf32>
    %103 = vector.extract_strided_slice %101 {offsets = [0, 0], sizes = [8, 20], strides = [1, 1]} : vector<8x30xf32> to vector<8x20xf32>
    %104 = arith.addf %102, %103 : vector<8x20xf32>
    %105 = arith.negf %104 : vector<8x20xf32>
    %106 = math.exp %105 : vector<8x20xf32>
    %cst_38 = arith.constant 1.000000e+00 : f32
    %107 = vector.broadcast %cst_38 : f32 to vector<8x20xf32>
    %108 = arith.addf %107, %106 : vector<8x20xf32>
    %109 = arith.divf %107, %108 : vector<8x20xf32>
    %110 = vector.extract_strided_slice %109 {offsets = [0, 0], sizes = [8, 10], strides = [1, 1]} : vector<8x20xf32> to vector<8x10xf32>
    %111 = vector.extract_strided_slice %109 {offsets = [0, 10], sizes = [8, 10], strides = [1, 1]} : vector<8x20xf32> to vector<8x10xf32>
    %112 = vector.extract_strided_slice %98 {offsets = [0, 20], sizes = [8, 10], strides = [1, 1]} : vector<8x30xf32> to vector<8x10xf32>
    %113 = vector.extract_strided_slice %101 {offsets = [0, 20], sizes = [8, 10], strides = [1, 1]} : vector<8x30xf32> to vector<8x10xf32>
    %114 = arith.mulf %110, %113 : vector<8x10xf32>
    %115 = arith.addf %112, %114 : vector<8x10xf32>
    %116 = math.tanh %115 : vector<8x10xf32>
    %cst_39 = arith.constant 1.000000e+00 : f32
    %117 = vector.broadcast %cst_39 : f32 to vector<8x10xf32>
    %118 = arith.subf %117, %111 : vector<8x10xf32>
    %119 = arith.mulf %118, %116 : vector<8x10xf32>
    %120 = arith.mulf %111, %96 : vector<8x10xf32>
    %121 = arith.addf %119, %120 : vector<8x10xf32>
    %c24_40 = arith.constant 24 : index
    %c0_41 = arith.constant 0 : index
    %122 = vector.load %arg7[%c24_40, %c0_41] : memref<64x10xf32, #tpu.memory_space<vmem>>, vector<8x10xf32>
    tpu.vector_store %arg7[%c24_40, %c0_41], %121 {strides = array<i32>} : memref<64x10xf32, #tpu.memory_space<vmem>>, vector<8x10xf32>,
    %c32 = arith.constant 32 : index
    %c0_42 = arith.constant 0 : index
    %123 = vector.load %arg5[%c32, %c0_42] : memref<64x30xf32, #tpu.memory_space<vmem>>, vector<8x30xf32>
    %cst_43 = arith.constant dense<0.000000e+00> : vector<8x30xf32>
    %124 = tpu.matmul %121, %1, %cst_43 {dimension_numbers = #tpu.dot_dimension_numbers<[1], [0], [0], [1], [0, 0, 1, 1], [], []>} : vector<8x10xf32>, vector<10x30xf32>, vector<8x30xf32> -> vector<8x30xf32>
    %125 = vector.broadcast %6 : vector<1x30xf32> to vector<8x30xf32>
    %126 = arith.addf %124, %125 : vector<8x30xf32>
    %127 = vector.extract_strided_slice %123 {offsets = [0, 0], sizes = [8, 20], strides = [1, 1]} : vector<8x30xf32> to vector<8x20xf32>
    %128 = vector.extract_strided_slice %126 {offsets = [0, 0], sizes = [8, 20], strides = [1, 1]} : vector<8x30xf32> to vector<8x20xf32>
    %129 = arith.addf %127, %128 : vector<8x20xf32>
    %130 = arith.negf %129 : vector<8x20xf32>
    %131 = math.exp %130 : vector<8x20xf32>
    %cst_44 = arith.constant 1.000000e+00 : f32
    %132 = vector.broadcast %cst_44 : f32 to vector<8x20xf32>
    %133 = arith.addf %132, %131 : vector<8x20xf32>
    %134 = arith.divf %132, %133 : vector<8x20xf32>
    %135 = vector.extract_strided_slice %134 {offsets = [0, 0], sizes = [8, 10], strides = [1, 1]} : vector<8x20xf32> to vector<8x10xf32>
    %136 = vector.extract_strided_slice %134 {offsets = [0, 10], sizes = [8, 10], strides = [1, 1]} : vector<8x20xf32> to vector<8x10xf32>
    %137 = vector.extract_strided_slice %123 {offsets = [0, 20], sizes = [8, 10], strides = [1, 1]} : vector<8x30xf32> to vector<8x10xf32>
    %138 = vector.extract_strided_slice %126 {offsets = [0, 20], sizes = [8, 10], strides = [1, 1]} : vector<8x30xf32> to vector<8x10xf32>
    %139 = arith.mulf %135, %138 : vector<8x10xf32>
    %140 = arith.addf %137, %139 : vector<8x10xf32>
    %141 = math.tanh %140 : vector<8x10xf32>
    %cst_45 = arith.constant 1.000000e+00 : f32
    %142 = vector.broadcast %cst_45 : f32 to vector<8x10xf32>
    %143 = arith.subf %142, %136 : vector<8x10xf32>
    %144 = arith.mulf %143, %141 : vector<8x10xf32>
    %145 = arith.mulf %136, %121 : vector<8x10xf32>
    %146 = arith.addf %144, %145 : vector<8x10xf32>
    %c32_46 = arith.constant 32 : index
    %c0_47 = arith.constant 0 : index
    %147 = vector.load %arg7[%c32_46, %c0_47] : memref<64x10xf32, #tpu.memory_space<vmem>>, vector<8x10xf32>
    tpu.vector_store %arg7[%c32_46, %c0_47], %146 {strides = array<i32>} : memref<64x10xf32, #tpu.memory_space<vmem>>, vector<8x10xf32>,
    %c40 = arith.constant 40 : index
    %c0_48 = arith.constant 0 : index
    %148 = vector.load %arg5[%c40, %c0_48] : memref<64x30xf32, #tpu.memory_space<vmem>>, vector<8x30xf32>
    %cst_49 = arith.constant dense<0.000000e+00> : vector<8x30xf32>
    %149 = tpu.matmul %146, %1, %cst_49 {dimension_numbers = #tpu.dot_dimension_numbers<[1], [0], [0], [1], [0, 0, 1, 1], [], []>} : vector<8x10xf32>, vector<10x30xf32>, vector<8x30xf32> -> vector<8x30xf32>
    %150 = vector.broadcast %6 : vector<1x30xf32> to vector<8x30xf32>
    %151 = arith.addf %149, %150 : vector<8x30xf32>
    %152 = vector.extract_strided_slice %148 {offsets = [0, 0], sizes = [8, 20], strides = [1, 1]} : vector<8x30xf32> to vector<8x20xf32>
    %153 = vector.extract_strided_slice %151 {offsets = [0, 0], sizes = [8, 20], strides = [1, 1]} : vector<8x30xf32> to vector<8x20xf32>
    %154 = arith.addf %152, %153 : vector<8x20xf32>
    %155 = arith.negf %154 : vector<8x20xf32>
    %156 = math.exp %155 : vector<8x20xf32>
    %cst_50 = arith.constant 1.000000e+00 : f32
    %157 = vector.broadcast %cst_50 : f32 to vector<8x20xf32>
    %158 = arith.addf %157, %156 : vector<8x20xf32>
    %159 = arith.divf %157, %158 : vector<8x20xf32>
    %160 = vector.extract_strided_slice %159 {offsets = [0, 0], sizes = [8, 10], strides = [1, 1]} : vector<8x20xf32> to vector<8x10xf32>
    %161 = vector.extract_strided_slice %159 {offsets = [0, 10], sizes = [8, 10], strides = [1, 1]} : vector<8x20xf32> to vector<8x10xf32>
    %162 = vector.extract_strided_slice %148 {offsets = [0, 20], sizes = [8, 10], strides = [1, 1]} : vector<8x30xf32> to vector<8x10xf32>
    %163 = vector.extract_strided_slice %151 {offsets = [0, 20], sizes = [8, 10], strides = [1, 1]} : vector<8x30xf32> to vector<8x10xf32>
    %164 = arith.mulf %160, %163 : vector<8x10xf32>
    %165 = arith.addf %162, %164 : vector<8x10xf32>
    %166 = math.tanh %165 : vector<8x10xf32>
    %cst_51 = arith.constant 1.000000e+00 : f32
    %167 = vector.broadcast %cst_51 : f32 to vector<8x10xf32>
    %168 = arith.subf %167, %161 : vector<8x10xf32>
    %169 = arith.mulf %168, %166 : vector<8x10xf32>
    %170 = arith.mulf %161, %146 : vector<8x10xf32>
    %171 = arith.addf %169, %170 : vector<8x10xf32>
    %c40_52 = arith.constant 40 : index
    %c0_53 = arith.constant 0 : index
    %172 = vector.load %arg7[%c40_52, %c0_53] : memref<64x10xf32, #tpu.memory_space<vmem>>, vector<8x10xf32>
    tpu.vector_store %arg7[%c40_52, %c0_53], %171 {strides = array<i32>} : memref<64x10xf32, #tpu.memory_space<vmem>>, vector<8x10xf32>,
    %c48_54 = arith.constant 48 : index
    %c0_55 = arith.constant 0 : index
    %173 = vector.load %arg5[%c48_54, %c0_55] : memref<64x30xf32, #tpu.memory_space<vmem>>, vector<8x30xf32>
    %cst_56 = arith.constant dense<0.000000e+00> : vector<8x30xf32>
    %174 = tpu.matmul %171, %1, %cst_56 {dimension_numbers = #tpu.dot_dimension_numbers<[1], [0], [0], [1], [0, 0, 1, 1], [], []>} : vector<8x10xf32>, vector<10x30xf32>, vector<8x30xf32> -> vector<8x30xf32>
    %175 = vector.broadcast %6 : vector<1x30xf32> to vector<8x30xf32>
    %176 = arith.addf %174, %175 : vector<8x30xf32>
    %177 = vector.extract_strided_slice %173 {offsets = [0, 0], sizes = [8, 20], strides = [1, 1]} : vector<8x30xf32> to vector<8x20xf32>
    %178 = vector.extract_strided_slice %176 {offsets = [0, 0], sizes = [8, 20], strides = [1, 1]} : vector<8x30xf32> to vector<8x20xf32>
    %179 = arith.addf %177, %178 : vector<8x20xf32>
    %180 = arith.negf %179 : vector<8x20xf32>
    %181 = math.exp %180 : vector<8x20xf32>
    %cst_57 = arith.constant 1.000000e+00 : f32
    %182 = vector.broadcast %cst_57 : f32 to vector<8x20xf32>
    %183 = arith.addf %182, %181 : vector<8x20xf32>
    %184 = arith.divf %182, %183 : vector<8x20xf32>
    %185 = vector.extract_strided_slice %184 {offsets = [0, 0], sizes = [8, 10], strides = [1, 1]} : vector<8x20xf32> to vector<8x10xf32>
    %186 = vector.extract_strided_slice %184 {offsets = [0, 10], sizes = [8, 10], strides = [1, 1]} : vector<8x20xf32> to vector<8x10xf32>
    %187 = vector.extract_strided_slice %173 {offsets = [0, 20], sizes = [8, 10], strides = [1, 1]} : vector<8x30xf32> to vector<8x10xf32>
    %188 = vector.extract_strided_slice %176 {offsets = [0, 20], sizes = [8, 10], strides = [1, 1]} : vector<8x30xf32> to vector<8x10xf32>
    %189 = arith.mulf %185, %188 : vector<8x10xf32>
    %190 = arith.addf %187, %189 : vector<8x10xf32>
    %191 = math.tanh %190 : vector<8x10xf32>
    %cst_58 = arith.constant 1.000000e+00 : f32
    %192 = vector.broadcast %cst_58 : f32 to vector<8x10xf32>
    %193 = arith.subf %192, %186 : vector<8x10xf32>
    %194 = arith.mulf %193, %191 : vector<8x10xf32>
    %195 = arith.mulf %186, %171 : vector<8x10xf32>
    %196 = arith.addf %194, %195 : vector<8x10xf32>
    %c48_59 = arith.constant 48 : index
    %c0_60 = arith.constant 0 : index
    %197 = vector.load %arg7[%c48_59, %c0_60] : memref<64x10xf32, #tpu.memory_space<vmem>>, vector<8x10xf32>
    tpu.vector_store %arg7[%c48_59, %c0_60], %196 {strides = array<i32>} : memref<64x10xf32, #tpu.memory_space<vmem>>, vector<8x10xf32>,
    %c56 = arith.constant 56 : index
    %c0_61 = arith.constant 0 : index
    %198 = vector.load %arg5[%c56, %c0_61] : memref<64x30xf32, #tpu.memory_space<vmem>>, vector<8x30xf32>
    %cst_62 = arith.constant dense<0.000000e+00> : vector<8x30xf32>
    %199 = tpu.matmul %196, %1, %cst_62 {dimension_numbers = #tpu.dot_dimension_numbers<[1], [0], [0], [1], [0, 0, 1, 1], [], []>} : vector<8x10xf32>, vector<10x30xf32>, vector<8x30xf32> -> vector<8x30xf32>
    %200 = vector.broadcast %6 : vector<1x30xf32> to vector<8x30xf32>
    %201 = arith.addf %199, %200 : vector<8x30xf32>
    %202 = vector.extract_strided_slice %198 {offsets = [0, 0], sizes = [8, 20], strides = [1, 1]} : vector<8x30xf32> to vector<8x20xf32>
    %203 = vector.extract_strided_slice %201 {offsets = [0, 0], sizes = [8, 20], strides = [1, 1]} : vector<8x30xf32> to vector<8x20xf32>
    %204 = arith.addf %202, %203 : vector<8x20xf32>
    %205 = arith.negf %204 : vector<8x20xf32>
    %206 = math.exp %205 : vector<8x20xf32>
    %cst_63 = arith.constant 1.000000e+00 : f32
    %207 = vector.broadcast %cst_63 : f32 to vector<8x20xf32>
    %208 = arith.addf %207, %206 : vector<8x20xf32>
    %209 = arith.divf %207, %208 : vector<8x20xf32>
    %210 = vector.extract_strided_slice %209 {offsets = [0, 0], sizes = [8, 10], strides = [1, 1]} : vector<8x20xf32> to vector<8x10xf32>
    %211 = vector.extract_strided_slice %209 {offsets = [0, 10], sizes = [8, 10], strides = [1, 1]} : vector<8x20xf32> to vector<8x10xf32>
    %212 = vector.extract_strided_slice %198 {offsets = [0, 20], sizes = [8, 10], strides = [1, 1]} : vector<8x30xf32> to vector<8x10xf32>
    %213 = vector.extract_strided_slice %201 {offsets = [0, 20], sizes = [8, 10], strides = [1, 1]} : vector<8x30xf32> to vector<8x10xf32>
    %214 = arith.mulf %210, %213 : vector<8x10xf32>
    %215 = arith.addf %212, %214 : vector<8x10xf32>
    %216 = math.tanh %215 : vector<8x10xf32>
    %cst_64 = arith.constant 1.000000e+00 : f32
    %217 = vector.broadcast %cst_64 : f32 to vector<8x10xf32>
    %218 = arith.subf %217, %211 : vector<8x10xf32>
    %219 = arith.mulf %218, %216 : vector<8x10xf32>
    %220 = arith.mulf %211, %196 : vector<8x10xf32>
    %221 = arith.addf %219, %220 : vector<8x10xf32>
    %c56_65 = arith.constant 56 : index
    %c0_66 = arith.constant 0 : index
    %222 = vector.load %arg7[%c56_65, %c0_66] : memref<64x10xf32, #tpu.memory_space<vmem>>, vector<8x10xf32>
    tpu.vector_store %arg7[%c56_65, %c0_66], %221 {strides = array<i32>} : memref<64x10xf32, #tpu.memory_space<vmem>>, vector<8x10xf32>,
    %c0_67 = arith.constant 0 : index
    %c0_68 = arith.constant 0 : index
    %223 = vector.load %arg7[%c0_67, %c0_68] : memref<64x10xf32, #tpu.memory_space<vmem>>, vector<64x10xf32>
    %cst_69 = arith.constant dense<0.000000e+00> : vector<64x30xf32>
    %224 = tpu.matmul %223, %2, %cst_69 {dimension_numbers = #tpu.dot_dimension_numbers<[1], [0], [0], [1], [0, 0, 1, 1], [], []>} : vector<64x10xf32>, vector<10x30xf32>, vector<64x30xf32> -> vector<64x30xf32>
    %225 = vector.broadcast %7 : vector<1x30xf32> to vector<64x30xf32>
    %226 = arith.addf %224, %225 : vector<64x30xf32>
    %c0_70 = arith.constant 0 : index
    %c0_71 = arith.constant 0 : index
    %227 = vector.load %arg6[%c0_70, %c0_71] : memref<64x30xf32, #tpu.memory_space<vmem>>, vector<64x30xf32>
    tpu.vector_store %arg6[%c0_70, %c0_71], %226 {strides = array<i32>} : memref<64x30xf32, #tpu.memory_space<vmem>>, vector<64x30xf32>,
    %cst_72 = arith.constant 0.000000e+00 : f32
    %228 = vector.broadcast %cst_72 : f32 to vector<8x10xf32>
    %c0_73 = arith.constant 0 : index
    %c0_74 = arith.constant 0 : index
    %229 = vector.load %arg6[%c0_73, %c0_74] : memref<64x30xf32, #tpu.memory_space<vmem>>, vector<8x30xf32>
    %cst_75 = arith.constant dense<0.000000e+00> : vector<8x30xf32>
    %230 = tpu.matmul %228, %3, %cst_75 {dimension_numbers = #tpu.dot_dimension_numbers<[1], [0], [0], [1], [0, 0, 1, 1], [], []>} : vector<8x10xf32>, vector<10x30xf32>, vector<8x30xf32> -> vector<8x30xf32>
    %231 = vector.broadcast %8 : vector<1x30xf32> to vector<8x30xf32>
    %232 = arith.addf %230, %231 : vector<8x30xf32>
    %233 = vector.extract_strided_slice %229 {offsets = [0, 0], sizes = [8, 20], strides = [1, 1]} : vector<8x30xf32> to vector<8x20xf32>
    %234 = vector.extract_strided_slice %232 {offsets = [0, 0], sizes = [8, 20], strides = [1, 1]} : vector<8x30xf32> to vector<8x20xf32>
    %235 = arith.addf %233, %234 : vector<8x20xf32>
    %236 = arith.negf %235 : vector<8x20xf32>
    %237 = math.exp %236 : vector<8x20xf32>
    %cst_76 = arith.constant 1.000000e+00 : f32
    %238 = vector.broadcast %cst_76 : f32 to vector<8x20xf32>
    %239 = arith.addf %238, %237 : vector<8x20xf32>
    %240 = arith.divf %238, %239 : vector<8x20xf32>
    %241 = vector.extract_strided_slice %240 {offsets = [0, 0], sizes = [8, 10], strides = [1, 1]} : vector<8x20xf32> to vector<8x10xf32>
    %242 = vector.extract_strided_slice %240 {offsets = [0, 10], sizes = [8, 10], strides = [1, 1]} : vector<8x20xf32> to vector<8x10xf32>
    %243 = vector.extract_strided_slice %229 {offsets = [0, 20], sizes = [8, 10], strides = [1, 1]} : vector<8x30xf32> to vector<8x10xf32>
    %244 = vector.extract_strided_slice %232 {offsets = [0, 20], sizes = [8, 10], strides = [1, 1]} : vector<8x30xf32> to vector<8x10xf32>
    %245 = arith.mulf %241, %244 : vector<8x10xf32>
    %246 = arith.addf %243, %245 : vector<8x10xf32>
    %247 = math.tanh %246 : vector<8x10xf32>
    %cst_77 = arith.constant 1.000000e+00 : f32
    %248 = vector.broadcast %cst_77 : f32 to vector<8x10xf32>
    %249 = arith.subf %248, %242 : vector<8x10xf32>
    %250 = arith.mulf %249, %247 : vector<8x10xf32>
    %251 = arith.mulf %242, %228 : vector<8x10xf32>
    %252 = arith.addf %250, %251 : vector<8x10xf32>
    %c0_78 = arith.constant 0 : index
    %c0_79 = arith.constant 0 : index
    %253 = vector.load %arg8[%c0_78, %c0_79] : memref<64x10xf32, #tpu.memory_space<vmem>>, vector<8x10xf32>
    tpu.vector_store %arg8[%c0_78, %c0_79], %252 {strides = array<i32>} : memref<64x10xf32, #tpu.memory_space<vmem>>, vector<8x10xf32>,
    %c8_80 = arith.constant 8 : index
    %c0_81 = arith.constant 0 : index
    %254 = vector.load %arg6[%c8_80, %c0_81] : memref<64x30xf32, #tpu.memory_space<vmem>>, vector<8x30xf32>
    %cst_82 = arith.constant dense<0.000000e+00> : vector<8x30xf32>
    %255 = tpu.matmul %252, %3, %cst_82 {dimension_numbers = #tpu.dot_dimension_numbers<[1], [0], [0], [1], [0, 0, 1, 1], [], []>} : vector<8x10xf32>, vector<10x30xf32>, vector<8x30xf32> -> vector<8x30xf32>
    %256 = vector.broadcast %8 : vector<1x30xf32> to vector<8x30xf32>
    %257 = arith.addf %255, %256 : vector<8x30xf32>
    %258 = vector.extract_strided_slice %254 {offsets = [0, 0], sizes = [8, 20], strides = [1, 1]} : vector<8x30xf32> to vector<8x20xf32>
    %259 = vector.extract_strided_slice %257 {offsets = [0, 0], sizes = [8, 20], strides = [1, 1]} : vector<8x30xf32> to vector<8x20xf32>
    %260 = arith.addf %258, %259 : vector<8x20xf32>
    %261 = arith.negf %260 : vector<8x20xf32>
    %262 = math.exp %261 : vector<8x20xf32>
    %cst_83 = arith.constant 1.000000e+00 : f32
    %263 = vector.broadcast %cst_83 : f32 to vector<8x20xf32>
    %264 = arith.addf %263, %262 : vector<8x20xf32>
    %265 = arith.divf %263, %264 : vector<8x20xf32>
    %266 = vector.extract_strided_slice %265 {offsets = [0, 0], sizes = [8, 10], strides = [1, 1]} : vector<8x20xf32> to vector<8x10xf32>
    %267 = vector.extract_strided_slice %265 {offsets = [0, 10], sizes = [8, 10], strides = [1, 1]} : vector<8x20xf32> to vector<8x10xf32>
    %268 = vector.extract_strided_slice %254 {offsets = [0, 20], sizes = [8, 10], strides = [1, 1]} : vector<8x30xf32> to vector<8x10xf32>
    %269 = vector.extract_strided_slice %257 {offsets = [0, 20], sizes = [8, 10], strides = [1, 1]} : vector<8x30xf32> to vector<8x10xf32>
    %270 = arith.mulf %266, %269 : vector<8x10xf32>
    %271 = arith.addf %268, %270 : vector<8x10xf32>
    %272 = math.tanh %271 : vector<8x10xf32>
    %cst_84 = arith.constant 1.000000e+00 : f32
    %273 = vector.broadcast %cst_84 : f32 to vector<8x10xf32>
    %274 = arith.subf %273, %267 : vector<8x10xf32>
    %275 = arith.mulf %274, %272 : vector<8x10xf32>
    %276 = arith.mulf %267, %252 : vector<8x10xf32>
    %277 = arith.addf %275, %276 : vector<8x10xf32>
    %c8_85 = arith.constant 8 : index
    %c0_86 = arith.constant 0 : index
    %278 = vector.load %arg8[%c8_85, %c0_86] : memref<64x10xf32, #tpu.memory_space<vmem>>, vector<8x10xf32>
    tpu.vector_store %arg8[%c8_85, %c0_86], %277 {strides = array<i32>} : memref<64x10xf32, #tpu.memory_space<vmem>>, vector<8x10xf32>,
    %c16_87 = arith.constant 16 : index
    %c0_88 = arith.constant 0 : index
    %279 = vector.load %arg6[%c16_87, %c0_88] : memref<64x30xf32, #tpu.memory_space<vmem>>, vector<8x30xf32>
    %cst_89 = arith.constant dense<0.000000e+00> : vector<8x30xf32>
    %280 = tpu.matmul %277, %3, %cst_89 {dimension_numbers = #tpu.dot_dimension_numbers<[1], [0], [0], [1], [0, 0, 1, 1], [], []>} : vector<8x10xf32>, vector<10x30xf32>, vector<8x30xf32> -> vector<8x30xf32>
    %281 = vector.broadcast %8 : vector<1x30xf32> to vector<8x30xf32>
    %282 = arith.addf %280, %281 : vector<8x30xf32>
    %283 = vector.extract_strided_slice %279 {offsets = [0, 0], sizes = [8, 20], strides = [1, 1]} : vector<8x30xf32> to vector<8x20xf32>
    %284 = vector.extract_strided_slice %282 {offsets = [0, 0], sizes = [8, 20], strides = [1, 1]} : vector<8x30xf32> to vector<8x20xf32>
    %285 = arith.addf %283, %284 : vector<8x20xf32>
    %286 = arith.negf %285 : vector<8x20xf32>
    %287 = math.exp %286 : vector<8x20xf32>
    %cst_90 = arith.constant 1.000000e+00 : f32
    %288 = vector.broadcast %cst_90 : f32 to vector<8x20xf32>
    %289 = arith.addf %288, %287 : vector<8x20xf32>
    %290 = arith.divf %288, %289 : vector<8x20xf32>
    %291 = vector.extract_strided_slice %290 {offsets = [0, 0], sizes = [8, 10], strides = [1, 1]} : vector<8x20xf32> to vector<8x10xf32>
    %292 = vector.extract_strided_slice %290 {offsets = [0, 10], sizes = [8, 10], strides = [1, 1]} : vector<8x20xf32> to vector<8x10xf32>
    %293 = vector.extract_strided_slice %279 {offsets = [0, 20], sizes = [8, 10], strides = [1, 1]} : vector<8x30xf32> to vector<8x10xf32>
    %294 = vector.extract_strided_slice %282 {offsets = [0, 20], sizes = [8, 10], strides = [1, 1]} : vector<8x30xf32> to vector<8x10xf32>
    %295 = arith.mulf %291, %294 : vector<8x10xf32>
    %296 = arith.addf %293, %295 : vector<8x10xf32>
    %297 = math.tanh %296 : vector<8x10xf32>
    %cst_91 = arith.constant 1.000000e+00 : f32
    %298 = vector.broadcast %cst_91 : f32 to vector<8x10xf32>
    %299 = arith.subf %298, %292 : vector<8x10xf32>
    %300 = arith.mulf %299, %297 : vector<8x10xf32>
    %301 = arith.mulf %292, %277 : vector<8x10xf32>
    %302 = arith.addf %300, %301 : vector<8x10xf32>
    %c16_92 = arith.constant 16 : index
    %c0_93 = arith.constant 0 : index
    %303 = vector.load %arg8[%c16_92, %c0_93] : memref<64x10xf32, #tpu.memory_space<vmem>>, vector<8x10xf32>
    tpu.vector_store %arg8[%c16_92, %c0_93], %302 {strides = array<i32>} : memref<64x10xf32, #tpu.memory_space<vmem>>, vector<8x10xf32>,
    %c24_94 = arith.constant 24 : index
    %c0_95 = arith.constant 0 : index
    %304 = vector.load %arg6[%c24_94, %c0_95] : memref<64x30xf32, #tpu.memory_space<vmem>>, vector<8x30xf32>
    %cst_96 = arith.constant dense<0.000000e+00> : vector<8x30xf32>
    %305 = tpu.matmul %302, %3, %cst_96 {dimension_numbers = #tpu.dot_dimension_numbers<[1], [0], [0], [1], [0, 0, 1, 1], [], []>} : vector<8x10xf32>, vector<10x30xf32>, vector<8x30xf32> -> vector<8x30xf32>
    %306 = vector.broadcast %8 : vector<1x30xf32> to vector<8x30xf32>
    %307 = arith.addf %305, %306 : vector<8x30xf32>
    %308 = vector.extract_strided_slice %304 {offsets = [0, 0], sizes = [8, 20], strides = [1, 1]} : vector<8x30xf32> to vector<8x20xf32>
    %309 = vector.extract_strided_slice %307 {offsets = [0, 0], sizes = [8, 20], strides = [1, 1]} : vector<8x30xf32> to vector<8x20xf32>
    %310 = arith.addf %308, %309 : vector<8x20xf32>
    %311 = arith.negf %310 : vector<8x20xf32>
    %312 = math.exp %311 : vector<8x20xf32>
    %cst_97 = arith.constant 1.000000e+00 : f32
    %313 = vector.broadcast %cst_97 : f32 to vector<8x20xf32>
    %314 = arith.addf %313, %312 : vector<8x20xf32>
    %315 = arith.divf %313, %314 : vector<8x20xf32>
    %316 = vector.extract_strided_slice %315 {offsets = [0, 0], sizes = [8, 10], strides = [1, 1]} : vector<8x20xf32> to vector<8x10xf32>
    %317 = vector.extract_strided_slice %315 {offsets = [0, 10], sizes = [8, 10], strides = [1, 1]} : vector<8x20xf32> to vector<8x10xf32>
    %318 = vector.extract_strided_slice %304 {offsets = [0, 20], sizes = [8, 10], strides = [1, 1]} : vector<8x30xf32> to vector<8x10xf32>
    %319 = vector.extract_strided_slice %307 {offsets = [0, 20], sizes = [8, 10], strides = [1, 1]} : vector<8x30xf32> to vector<8x10xf32>
    %320 = arith.mulf %316, %319 : vector<8x10xf32>
    %321 = arith.addf %318, %320 : vector<8x10xf32>
    %322 = math.tanh %321 : vector<8x10xf32>
    %cst_98 = arith.constant 1.000000e+00 : f32
    %323 = vector.broadcast %cst_98 : f32 to vector<8x10xf32>
    %324 = arith.subf %323, %317 : vector<8x10xf32>
    %325 = arith.mulf %324, %322 : vector<8x10xf32>
    %326 = arith.mulf %317, %302 : vector<8x10xf32>
    %327 = arith.addf %325, %326 : vector<8x10xf32>
    %c24_99 = arith.constant 24 : index
    %c0_100 = arith.constant 0 : index
    %328 = vector.load %arg8[%c24_99, %c0_100] : memref<64x10xf32, #tpu.memory_space<vmem>>, vector<8x10xf32>
    tpu.vector_store %arg8[%c24_99, %c0_100], %327 {strides = array<i32>} : memref<64x10xf32, #tpu.memory_space<vmem>>, vector<8x10xf32>,
    %c32_101 = arith.constant 32 : index
    %c0_102 = arith.constant 0 : index
    %329 = vector.load %arg6[%c32_101, %c0_102] : memref<64x30xf32, #tpu.memory_space<vmem>>, vector<8x30xf32>
    %cst_103 = arith.constant dense<0.000000e+00> : vector<8x30xf32>
    %330 = tpu.matmul %327, %3, %cst_103 {dimension_numbers = #tpu.dot_dimension_numbers<[1], [0], [0], [1], [0, 0, 1, 1], [], []>} : vector<8x10xf32>, vector<10x30xf32>, vector<8x30xf32> -> vector<8x30xf32>
    %331 = vector.broadcast %8 : vector<1x30xf32> to vector<8x30xf32>
    %332 = arith.addf %330, %331 : vector<8x30xf32>
    %333 = vector.extract_strided_slice %329 {offsets = [0, 0], sizes = [8, 20], strides = [1, 1]} : vector<8x30xf32> to vector<8x20xf32>
    %334 = vector.extract_strided_slice %332 {offsets = [0, 0], sizes = [8, 20], strides = [1, 1]} : vector<8x30xf32> to vector<8x20xf32>
    %335 = arith.addf %333, %334 : vector<8x20xf32>
    %336 = arith.negf %335 : vector<8x20xf32>
    %337 = math.exp %336 : vector<8x20xf32>
    %cst_104 = arith.constant 1.000000e+00 : f32
    %338 = vector.broadcast %cst_104 : f32 to vector<8x20xf32>
    %339 = arith.addf %338, %337 : vector<8x20xf32>
    %340 = arith.divf %338, %339 : vector<8x20xf32>
    %341 = vector.extract_strided_slice %340 {offsets = [0, 0], sizes = [8, 10], strides = [1, 1]} : vector<8x20xf32> to vector<8x10xf32>
    %342 = vector.extract_strided_slice %340 {offsets = [0, 10], sizes = [8, 10], strides = [1, 1]} : vector<8x20xf32> to vector<8x10xf32>
    %343 = vector.extract_strided_slice %329 {offsets = [0, 20], sizes = [8, 10], strides = [1, 1]} : vector<8x30xf32> to vector<8x10xf32>
    %344 = vector.extract_strided_slice %332 {offsets = [0, 20], sizes = [8, 10], strides = [1, 1]} : vector<8x30xf32> to vector<8x10xf32>
    %345 = arith.mulf %341, %344 : vector<8x10xf32>
    %346 = arith.addf %343, %345 : vector<8x10xf32>
    %347 = math.tanh %346 : vector<8x10xf32>
    %cst_105 = arith.constant 1.000000e+00 : f32
    %348 = vector.broadcast %cst_105 : f32 to vector<8x10xf32>
    %349 = arith.subf %348, %342 : vector<8x10xf32>
    %350 = arith.mulf %349, %347 : vector<8x10xf32>
    %351 = arith.mulf %342, %327 : vector<8x10xf32>
    %352 = arith.addf %350, %351 : vector<8x10xf32>
    %c32_106 = arith.constant 32 : index
    %c0_107 = arith.constant 0 : index
    %353 = vector.load %arg8[%c32_106, %c0_107] : memref<64x10xf32, #tpu.memory_space<vmem>>, vector<8x10xf32>
    tpu.vector_store %arg8[%c32_106, %c0_107], %352 {strides = array<i32>} : memref<64x10xf32, #tpu.memory_space<vmem>>, vector<8x10xf32>,
    %c40_108 = arith.constant 40 : index
    %c0_109 = arith.constant 0 : index
    %354 = vector.load %arg6[%c40_108, %c0_109] : memref<64x30xf32, #tpu.memory_space<vmem>>, vector<8x30xf32>
    %cst_110 = arith.constant dense<0.000000e+00> : vector<8x30xf32>
    %355 = tpu.matmul %352, %3, %cst_110 {dimension_numbers = #tpu.dot_dimension_numbers<[1], [0], [0], [1], [0, 0, 1, 1], [], []>} : vector<8x10xf32>, vector<10x30xf32>, vector<8x30xf32> -> vector<8x30xf32>
    %356 = vector.broadcast %8 : vector<1x30xf32> to vector<8x30xf32>
    %357 = arith.addf %355, %356 : vector<8x30xf32>
    %358 = vector.extract_strided_slice %354 {offsets = [0, 0], sizes = [8, 20], strides = [1, 1]} : vector<8x30xf32> to vector<8x20xf32>
    %359 = vector.extract_strided_slice %357 {offsets = [0, 0], sizes = [8, 20], strides = [1, 1]} : vector<8x30xf32> to vector<8x20xf32>
    %360 = arith.addf %358, %359 : vector<8x20xf32>
    %361 = arith.negf %360 : vector<8x20xf32>
    %362 = math.exp %361 : vector<8x20xf32>
    %cst_111 = arith.constant 1.000000e+00 : f32
    %363 = vector.broadcast %cst_111 : f32 to vector<8x20xf32>
    %364 = arith.addf %363, %362 : vector<8x20xf32>
    %365 = arith.divf %363, %364 : vector<8x20xf32>
    %366 = vector.extract_strided_slice %365 {offsets = [0, 0], sizes = [8, 10], strides = [1, 1]} : vector<8x20xf32> to vector<8x10xf32>
    %367 = vector.extract_strided_slice %365 {offsets = [0, 10], sizes = [8, 10], strides = [1, 1]} : vector<8x20xf32> to vector<8x10xf32>
    %368 = vector.extract_strided_slice %354 {offsets = [0, 20], sizes = [8, 10], strides = [1, 1]} : vector<8x30xf32> to vector<8x10xf32>
    %369 = vector.extract_strided_slice %357 {offsets = [0, 20], sizes = [8, 10], strides = [1, 1]} : vector<8x30xf32> to vector<8x10xf32>
    %370 = arith.mulf %366, %369 : vector<8x10xf32>
    %371 = arith.addf %368, %370 : vector<8x10xf32>
    %372 = math.tanh %371 : vector<8x10xf32>
    %cst_112 = arith.constant 1.000000e+00 : f32
    %373 = vector.broadcast %cst_112 : f32 to vector<8x10xf32>
    %374 = arith.subf %373, %367 : vector<8x10xf32>
    %375 = arith.mulf %374, %372 : vector<8x10xf32>
    %376 = arith.mulf %367, %352 : vector<8x10xf32>
    %377 = arith.addf %375, %376 : vector<8x10xf32>
    %c40_113 = arith.constant 40 : index
    %c0_114 = arith.constant 0 : index
    %378 = vector.load %arg8[%c40_113, %c0_114] : memref<64x10xf32, #tpu.memory_space<vmem>>, vector<8x10xf32>
    tpu.vector_store %arg8[%c40_113, %c0_114], %377 {strides = array<i32>} : memref<64x10xf32, #tpu.memory_space<vmem>>, vector<8x10xf32>,
    %c48_115 = arith.constant 48 : index
    %c0_116 = arith.constant 0 : index
    %379 = vector.load %arg6[%c48_115, %c0_116] : memref<64x30xf32, #tpu.memory_space<vmem>>, vector<8x30xf32>
    %cst_117 = arith.constant dense<0.000000e+00> : vector<8x30xf32>
    %380 = tpu.matmul %377, %3, %cst_117 {dimension_numbers = #tpu.dot_dimension_numbers<[1], [0], [0], [1], [0, 0, 1, 1], [], []>} : vector<8x10xf32>, vector<10x30xf32>, vector<8x30xf32> -> vector<8x30xf32>
    %381 = vector.broadcast %8 : vector<1x30xf32> to vector<8x30xf32>
    %382 = arith.addf %380, %381 : vector<8x30xf32>
    %383 = vector.extract_strided_slice %379 {offsets = [0, 0], sizes = [8, 20], strides = [1, 1]} : vector<8x30xf32> to vector<8x20xf32>
    %384 = vector.extract_strided_slice %382 {offsets = [0, 0], sizes = [8, 20], strides = [1, 1]} : vector<8x30xf32> to vector<8x20xf32>
    %385 = arith.addf %383, %384 : vector<8x20xf32>
    %386 = arith.negf %385 : vector<8x20xf32>
    %387 = math.exp %386 : vector<8x20xf32>
    %cst_118 = arith.constant 1.000000e+00 : f32
    %388 = vector.broadcast %cst_118 : f32 to vector<8x20xf32>
    %389 = arith.addf %388, %387 : vector<8x20xf32>
    %390 = arith.divf %388, %389 : vector<8x20xf32>
    %391 = vector.extract_strided_slice %390 {offsets = [0, 0], sizes = [8, 10], strides = [1, 1]} : vector<8x20xf32> to vector<8x10xf32>
    %392 = vector.extract_strided_slice %390 {offsets = [0, 10], sizes = [8, 10], strides = [1, 1]} : vector<8x20xf32> to vector<8x10xf32>
    %393 = vector.extract_strided_slice %379 {offsets = [0, 20], sizes = [8, 10], strides = [1, 1]} : vector<8x30xf32> to vector<8x10xf32>
    %394 = vector.extract_strided_slice %382 {offsets = [0, 20], sizes = [8, 10], strides = [1, 1]} : vector<8x30xf32> to vector<8x10xf32>
    %395 = arith.mulf %391, %394 : vector<8x10xf32>
    %396 = arith.addf %393, %395 : vector<8x10xf32>
    %397 = math.tanh %396 : vector<8x10xf32>
    %cst_119 = arith.constant 1.000000e+00 : f32
    %398 = vector.broadcast %cst_119 : f32 to vector<8x10xf32>
    %399 = arith.subf %398, %392 : vector<8x10xf32>
    %400 = arith.mulf %399, %397 : vector<8x10xf32>
    %401 = arith.mulf %392, %377 : vector<8x10xf32>
    %402 = arith.addf %400, %401 : vector<8x10xf32>
    %c48_120 = arith.constant 48 : index
    %c0_121 = arith.constant 0 : index
    %403 = vector.load %arg8[%c48_120, %c0_121] : memref<64x10xf32, #tpu.memory_space<vmem>>, vector<8x10xf32>
    tpu.vector_store %arg8[%c48_120, %c0_121], %402 {strides = array<i32>} : memref<64x10xf32, #tpu.memory_space<vmem>>, vector<8x10xf32>,
    %c56_122 = arith.constant 56 : index
    %c0_123 = arith.constant 0 : index
    %404 = vector.load %arg6[%c56_122, %c0_123] : memref<64x30xf32, #tpu.memory_space<vmem>>, vector<8x30xf32>
    %cst_124 = arith.constant dense<0.000000e+00> : vector<8x30xf32>
    %405 = tpu.matmul %402, %3, %cst_124 {dimension_numbers = #tpu.dot_dimension_numbers<[1], [0], [0], [1], [0, 0, 1, 1], [], []>} : vector<8x10xf32>, vector<10x30xf32>, vector<8x30xf32> -> vector<8x30xf32>
    %406 = vector.broadcast %8 : vector<1x30xf32> to vector<8x30xf32>
    %407 = arith.addf %405, %406 : vector<8x30xf32>
    %408 = vector.extract_strided_slice %404 {offsets = [0, 0], sizes = [8, 20], strides = [1, 1]} : vector<8x30xf32> to vector<8x20xf32>
    %409 = vector.extract_strided_slice %407 {offsets = [0, 0], sizes = [8, 20], strides = [1, 1]} : vector<8x30xf32> to vector<8x20xf32>
    %410 = arith.addf %408, %409 : vector<8x20xf32>
    %411 = arith.negf %410 : vector<8x20xf32>
    %412 = math.exp %411 : vector<8x20xf32>
    %cst_125 = arith.constant 1.000000e+00 : f32
    %413 = vector.broadcast %cst_125 : f32 to vector<8x20xf32>
    %414 = arith.addf %413, %412 : vector<8x20xf32>
    %415 = arith.divf %413, %414 : vector<8x20xf32>
    %416 = vector.extract_strided_slice %415 {offsets = [0, 0], sizes = [8, 10], strides = [1, 1]} : vector<8x20xf32> to vector<8x10xf32>
    %417 = vector.extract_strided_slice %415 {offsets = [0, 10], sizes = [8, 10], strides = [1, 1]} : vector<8x20xf32> to vector<8x10xf32>
    %418 = vector.extract_strided_slice %404 {offsets = [0, 20], sizes = [8, 10], strides = [1, 1]} : vector<8x30xf32> to vector<8x10xf32>
    %419 = vector.extract_strided_slice %407 {offsets = [0, 20], sizes = [8, 10], strides = [1, 1]} : vector<8x30xf32> to vector<8x10xf32>
    %420 = arith.mulf %416, %419 : vector<8x10xf32>
    %421 = arith.addf %418, %420 : vector<8x10xf32>
    %422 = math.tanh %421 : vector<8x10xf32>
    %cst_126 = arith.constant 1.000000e+00 : f32
    %423 = vector.broadcast %cst_126 : f32 to vector<8x10xf32>
    %424 = arith.subf %423, %417 : vector<8x10xf32>
    %425 = arith.mulf %424, %422 : vector<8x10xf32>
    %426 = arith.mulf %417, %402 : vector<8x10xf32>
    %427 = arith.addf %425, %426 : vector<8x10xf32>
    %c56_127 = arith.constant 56 : index
    %c0_128 = arith.constant 0 : index
    %428 = vector.load %arg8[%c56_127, %c0_128] : memref<64x10xf32, #tpu.memory_space<vmem>>, vector<8x10xf32>
    tpu.vector_store %arg8[%c56_127, %c0_128], %427 {strides = array<i32>} : memref<64x10xf32, #tpu.memory_space<vmem>>, vector<8x10xf32>,
    %c0_129 = arith.constant 0 : index
    %c0_130 = arith.constant 0 : index
    %429 = vector.load %arg8[%c0_129, %c0_130] : memref<64x10xf32, #tpu.memory_space<vmem>>, vector<64x10xf32>
    %cst_131 = arith.constant dense<0.000000e+00> : vector<64x29xf32>
    %430 = tpu.matmul %429, %4, %cst_131 {dimension_numbers = #tpu.dot_dimension_numbers<[1], [0], [0], [1], [0, 0, 1, 1], [], []>} : vector<64x10xf32>, vector<10x29xf32>, vector<64x29xf32> -> vector<64x29xf32>
    %431 = vector.broadcast %9 : vector<1x29xf32> to vector<64x29xf32>
    %432 = arith.addf %430, %431 : vector<64x29xf32>
    %c0_132 = arith.constant 0 : index
    %c0_133 = arith.constant 0 : index
    %433 = vector.load %arg3[%c0_132, %c0_133] : memref<64x29xf32, #tpu.memory_space<vmem>>, vector<64x29xf32>
    tpu.vector_store %arg3[%c0_132, %c0_133], %432 {strides = array<i32>} : memref<64x29xf32, #tpu.memory_space<vmem>>, vector<64x29xf32>,
    %c0_134 = arith.constant 0 : index
    %c0_135 = arith.constant 0 : index
    %c0_136 = arith.constant 0 : index
    %434 = vector.load %arg4[%c0_134, %c0_135, %c0_136] : memref<2x8x10xf32, #tpu.memory_space<vmem>>, vector<1x8x10xf32>
    %435 = vector.shape_cast %434 : vector<1x8x10xf32> to vector<8x10xf32>
    %436 = vector.shape_cast %221 : vector<8x10xf32> to vector<1x8x10xf32>
    tpu.vector_store %arg4[%c0_134, %c0_135, %c0_136], %436 {strides = array<i32>} : memref<2x8x10xf32, #tpu.memory_space<vmem>>, vector<1x8x10xf32>,
    %c1 = arith.constant 1 : index
    %c0_137 = arith.constant 0 : index
    %c0_138 = arith.constant 0 : index
    %437 = vector.load %arg4[%c1, %c0_137, %c0_138] : memref<2x8x10xf32, #tpu.memory_space<vmem>>, vector<1x8x10xf32>
    %438 = vector.shape_cast %437 : vector<1x8x10xf32> to vector<8x10xf32>
    %439 = vector.shape_cast %427 : vector<8x10xf32> to vector<1x8x10xf32>
    tpu.vector_store %arg4[%c1, %c0_137, %c0_138], %439 {strides = array<i32>} : memref<2x8x10xf32, #tpu.memory_space<vmem>>, vector<1x8x10xf32>,
    return
  }
}

</mosaic_0001>

<bundles_post_ra>
// kernel: decoder_forward.1
= control target key start
LH: loop header
LB: loop body
LE: loop exit
PB: predicated region body
PF: predicated region fallthrough
CT: control target
= control target key end

     0   :  { %v1675_v0 = vmov 0   ;;  %v43_v8 = vlaneseq  ;;  %v1676_v13 = vmov 0.0   ;;  %s1677_s29 = smov 15   ;;  %vm143_vm7 = vcmask 392192   ;;  %s1678_s13 = smov 108   ;;  %s2136_s0 = inlined_call_operand.vmem [shape: s32[64,1], index: 0, kind: input, shape index: {}]   ;;  %s2137_s2 = inlined_call_operand.vmem [shape: f32[120,30], index: 2, kind: input, shape index: {}]   ;;  %s2138_s1 = inlined_call_operand.vmem [shape: f32[64,15], index: 1, kind: input, shape index: {}]   ;;  %s2139_s3 = inlined_call_operand.vmem [shape: f32[64,29], index: 3, kind: output, shape index: {0}]   ;;  %s2140_s4 = inlined_call_operand.vmem [shape: f32[2,8,10], index: 4, kind: output, shape index: {1}]  }
   0x1   :  { %1570 = vset.pattern.permute.xlu0 %v1675_v0  ;;  %v35_v1 = vld [vmem:[%s2136_s0] sm:$0xff]  ;;  %1571 = vset.pattern.permute.xlu1 %v1675_v0  ;;  %v37_v2 = vld [vmem:[%s2136_s0 + $0x10] sm:$0xff]  ;;  %v36_v4 = vld [vmem:[%s2136_s0 + $0x8] sm:$0xff]  ;;  %vm133_vm8 = vcmask 121856   ;;  %vm224_vm10 = vcmask 1041408   ;;  %vm209_vm11 = vcmask 244736  }
   0x2   :  { %46 = vperm.xlu0 %1570, %v35_v1   ;;  %52 = vperm.xlu1 %1571, %v37_v2   ;;  %v39_v3 = vld [vmem:[%s2136_s0 + $0x20] sm:$0xff]  ;;  %v38_v5 = vld [vmem:[%s2136_s0 + $0x18] sm:$0xff]  ;;  %v40_v6 = vld [vmem:[%s2136_s0 + $0x28] sm:$0xff]  ;;  %v44_v10 = vand.u32 127, %v43_v8  ;;  %s1679_s14 = smov 20   ;;  %s1680_s15 = smov 118  }
   0x3   :  { %1572 = vset.pattern.permute.xlu2 %v1675_v0  ;;  %v41_v7 = vld [vmem:[%s2136_s0 + $0x30] sm:$0xff]  ;;  %v42_v18 = vld [vmem:[%s2136_s0 + $0x38] sm:$0xff]  ;;  %v21_v26 = vld [vmem:[%s2137_s2 + $0x28] sm:$0xff] }
   0x4   :  { %58 = vperm.xlu2 %1572, %v39_v3   ;;  %v20_v27 = vld [vmem:[%s2137_s2 + $0x20] sm:$0xff]  ;;  %178 = vmatpush.msra.mxu0 %v21_v26  ;;  %v19_v28 = vld [vmem:[%s2137_s2 + $0x18] sm:$0xff]  ;;  %v18_v29 = vld [vmem:[%s2137_s2 + $0x10] sm:$0xff] }
   0x5   :  { %v17_v30 = vld [vmem:[%s2137_s2 + $0x8] sm:$0xff]  ;;  %v16_v31 = vld [vmem:[%s2137_s2] sm:$0xff]  ;;  %v95_v41 = vld [vmem:[%s2138_s1 + $0x10] sm:$0xff] }
   0x6   :  { %179 = vmatpush.msra.mxu0 %v20_v27  ;;  %v93_v32 = vld [vmem:[%s2138_s1] sm:$0xff]  ;;  %v94_v36 = vld [vmem:[%s2138_s1 + $0x8] sm:$0xff]  ;;  %v1782_v43 = vld [vmem:[%s2137_s2 + $0x38] sm:$0x3] }
   0x7   :  { %v1787_v44 = vld [vmem:[%s2137_s2 + $0x30] sm:$0xff]  ;;  %1499 = vmatpush.msk.msra.mxu2 %vm224_vm10, %v1782_v43  ;;  %v96_v46 = vld [vmem:[%s2138_s1 + $0x18] sm:$0xff]  ;;  %1502 = vmatpush.msk.msra.mxu3 %vm224_vm10, %v1782_v43  ;;  %v97_v49 = vld [vmem:[%s2138_s1 + $0x20] sm:$0xff] }
   0x8   :  { %180 = vmatpush.msra.mxu0 %v19_v28  ;;  %1505 = vmatpush.msk.msra.mxu1 %vm224_vm10, %v1782_v43  ;;  %v98_v52 = vld [vmem:[%s2138_s1 + $0x28] sm:$0xff]  ;;  %v99_v55 = vld [vmem:[%s2138_s1 + $0x30] sm:$0xff]  ;;  %v100_v57 = vld [vmem:[%s2138_s1 + $0x38] sm:$0xff] }
   0x9   :  { %310 = vmatpush.msra.mxu2 %v1787_v44  ;;  %377 = vmatpush.msra.mxu3 %v1787_v44  ;;  %v1573_v58 = vld [vmem:[%s2137_s2 + $0x70] ss:$0 sm:$0xff] }
   0xa   :  { %49 = vperm.xlu0 %1570, %v36_v4   ;;  %55 = vperm.xlu1 %1571, %v38_v5  }
   0xb   :  { %181 = vmatpush.msra.mxu0 %v18_v29  ;;  %444 = vmatpush.msra.mxu1 %v1787_v44 }
   0xc   :  { %61 = vperm.xlu2 %1572, %v40_v6   ;;  %1508 = vmatpush.msk.msrb.mxu2 %vm224_vm10, %v1782_v43 }
   0xd   :  { %182 = vmatpush.msra.mxu0 %v17_v30  ;;  %1511 = vmatpush.msk.msrb.mxu3 %vm224_vm10, %v1782_v43 }
   0xe   :  { %1514 = vmatpush.msk.msrb.mxu1 %vm224_vm10, %v1782_v43  ;;  %511 = vmatpush.msrb.mxu2 %v1787_v44 }
   0xf   :  { %183 = vmatpush.msra.mxu0 %v16_v31  ;;  %578 = vmatpush.msrb.mxu3 %v1787_v44 }
  0x10   :  { %645 = vmatpush.msrb.mxu1 %v1787_v44 }
  0x11   :  { %1497 = vmatpush.msk.msrb.mxu0 %vm224_vm10, %v1782_v43 }
  0x12   :  { %64 = vperm.xlu1 %1571, %v41_v7  }
  0x13   :  { %243 = vmatpush.msrb.mxu0 %v1787_v44 }
  0x5e   :  { %v59_v9 = vpop.permute.xlu2 %58 }
  0x5f   :  { %vm73_vm4 = vcmp.eq.s32.totalorder %v59_v9, %v44_v10 }
  0x60   :  { %v1485_v22 = vsel %vm73_vm4, 1.0, %v1676_v13 }
  0x66   :  { %v62_v16 = vpop.permute.xlu2 %61 }
  0x67   :  { %vm74_vm2 = vcmp.eq.s32.totalorder %v62_v16, %v44_v10 }
  0x68   :  { %v1486_v19 = vsel %vm74_vm2, 1.0, %v1676_v13 }
  0x74   :  { %v47_v11 = vpop.permute.xlu0 %46  ;;  %v53_v12 = vpop.permute.xlu1 %52 }
  0x75   :  { %vm69_vm0 = vcmp.eq.s32.totalorder %v47_v11, %v44_v10  ;;  %vm71_vm1 = vcmp.eq.s32.totalorder %v53_v12, %v44_v10 }
  0x76   :  { %v1481_v14 = vsel %vm69_vm0, 1.0, %v1676_v13  ;;  %v1483_v15 = vsel %vm71_vm1, 1.0, %v1676_v13  ;;  %vm220_vm0 = vcmask 80896  }
  0x77   :  { %109 = vrot.lane.b32.xlu0 %v1481_v14, %s1677_s29  ;;  %113 = vrot.lane.b32.xlu1 %v1483_v15, %s1677_s29  ;;  %v1850_v14 = vld [vmem:[%s2137_s2 + $0x71] ss:$0 sm:$0xff] }
  0x7c   :  { %v50_v17 = vpop.permute.xlu0 %49  ;;  %v56_v21 = vpop.permute.xlu1 %55 }
  0x7d   :  { %vm70_vm3 = vcmp.eq.s32.totalorder %v50_v17, %v44_v10  ;;  %vm72_vm5 = vcmp.eq.s32.totalorder %v56_v21, %v44_v10 }
  0x7e   :  { %v1482_v20 = vsel %vm70_vm3, 1.0, %v1676_v13  ;;  %v1484_v23 = vsel %vm72_vm5, 1.0, %v1676_v13 }
  0x7f   :  { %67 = vperm.xlu0 %1570, %v42_v18   ;;  %111 = vrot.lane.b32.xlu2 %v1482_v20, %s1677_s29 }
  0x80   :  { %119 = vrot.lane.b32.xlu1 %v1486_v19, %s1677_s29 }
  0x84   :  { %v65_v24 = vpop.permute.xlu1 %64 }
  0x85   :  { %vm75_vm6 = vcmp.eq.s32.totalorder %v65_v24, %v44_v10 }
  0x86   :  { %v1487_v25 = vsel %vm75_vm6, 1.0, %v1676_v13 }
  0x87   :  { %117 = vrot.lane.b32.xlu0 %v1485_v22, %s1677_s29  ;;  %115 = vrot.lane.b32.xlu2 %v1484_v23, %s1677_s29 }
  0x8f   :  { %121 = vrot.lane.b32.xlu2 %v1487_v25, %s1677_s29 }
  0xd9   :  { %v112_v35 = vpop.permute.xlu2 %111 }
  0xda   :  { %v135_v38 = vsel %vm133_vm8, %v94_v36, %v112_v35 }
  0xe1   :  { %v116_v45 = vpop.permute.xlu2 %115 }
  0xe2   :  { %v137_v47 = vsel %vm133_vm8, %v96_v46, %v116_v45 }
  0xe9   :  { %v110_v33 = vpop.permute.xlu0 %109  ;;  %v114_v40 = vpop.permute.xlu1 %113 }
  0xea   :  { %v134_v34 = vsel %vm133_vm8, %v93_v32, %v110_v33  ;;  %v136_v42 = vsel %vm133_vm8, %v95_v41, %v114_v40  ;;  %v122_v54 = vpop.permute.xlu2 %121 }
  0xeb   :  { %1489 = vmatmul.msk.f32.vlgmr.msra.gmra.mxu0 %vm143_vm7, %v134_v34  ;;  %v140_v56 = vsel %vm133_vm8, %v99_v55, %v122_v54 }
  0xf1   :  { %v68_v37 = vpop.permute.xlu0 %67 }
  0xf2   :  { %vm76_vm9 = vcmp.eq.s32.totalorder %v68_v37, %v44_v10  ;;  %v120_v51 = vpop.permute.xlu1 %119 }
  0xf3   :  { %v1488_v39 = vsel %vm76_vm9, 1.0, %v1676_v13  ;;  %1490 = vmatmul.msk.f32.gmra.mxu0 %vm143_vm7, %v135_v38  ;;  %v139_v53 = vsel %vm133_vm8, %v98_v52, %v120_v51 }
  0xf4   :  { %123 = vrot.lane.b32.xlu0 %v1488_v39, %s1677_s29 }
  0xf9   :  { %v118_v48 = vpop.permute.xlu0 %117 }
  0xfa   :  { %v138_v50 = vsel %vm133_vm8, %v97_v49, %v118_v48 }
  0xfb   :  { %1491 = vmatmul.msk.f32.gmra.mxu0 %vm143_vm7, %v136_v42 }
 0x103   :  { %1492 = vmatmul.msk.f32.gmra.mxu0 %vm143_vm7, %v137_v47 }
 0x10b   :  { %1493 = vmatmul.msk.f32.gmra.mxu0 %vm143_vm7, %v138_v50 }
 0x113   :  { %1494 = vmatmul.msk.f32.gmra.mxu0 %vm143_vm7, %v139_v53 }
 0x11b   :  { %1495 = vmatmul.msk.f32.gmra.mxu0 %vm143_vm7, %v140_v56 }
 0x166   :  { %v124_v59 = vpop.permute.xlu0 %123 }
 0x167   :  { %v141_v60 = vsel %vm133_vm8, %v100_v57, %v124_v59 }
 0x168   :  { %v185_v61 = vpop.f32.mrf.mxu0  ;;  %1496 = vmatmul.msk.f32.gmra.mxu0 %vm143_vm7, %v141_v60 }
 0x169   :  { %v186_v62 = vadd.f32 %v1573_v58, %v185_v61 }
 0x16b   :  { %210 = vst.msk [vmem:[#allocation2] sm:$0xff] %vm209_vm11, %v186_v62 }
 0x170   :  { %v188_v63 = vpop.f32.mrf.mxu0  ;;  %244 = vmatmul.f32.vlgmr.msrb.gmra.mxu0 %v1676_v13 }
 0x171   :  { %v189_v0 = vadd.f32 %v1573_v58, %v188_v63 }
 0x172   :  { %v218_v17 = vld [vmem:[#allocation2] sm:$0xff] }
 0x173   :  { %211 = vst.msk [vmem:[#allocation2 + $0x8] sm:$0xff] %vm209_vm11, %v189_v0 }
 0x178   :  { %v191_v1 = vpop.f32.mrf.mxu0 }
 0x179   :  { %v192_v2 = vadd.f32 %v1573_v58, %v191_v1 }
 0x17a   :  { %v292_v47 = vld [vmem:[#allocation2 + $0x8] sm:$0xff] }
 0x17b   :  { %212 = vst.msk [vmem:[#allocation2 + $0x10] sm:$0xff] %vm209_vm11, %v192_v2 }
 0x180   :  { %v194_v3 = vpop.f32.mrf.mxu0 }
 0x181   :  { %v195_v4 = vadd.f32 %v1573_v58, %v194_v3 }
 0x183   :  { %213 = vst.msk [vmem:[#allocation2 + $0x18] sm:$0xff] %vm209_vm11, %v195_v4 }
 0x188   :  { %v197_v5 = vpop.f32.mrf.mxu0 }
 0x189   :  { %v198_v6 = vadd.f32 %v1573_v58, %v197_v5 }
 0x18b   :  { %214 = vst.msk [vmem:[#allocation2 + $0x20] sm:$0xff] %vm209_vm11, %v198_v6 }
 0x190   :  { %v200_v7 = vpop.f32.mrf.mxu0 }
 0x191   :  { %v201_v8 = vadd.f32 %v1573_v58, %v200_v7 }
 0x193   :  { %215 = vst.msk [vmem:[#allocation2 + $0x28] sm:$0xff] %vm209_vm11, %v201_v8 }
 0x198   :  { %v203_v9 = vpop.f32.mrf.mxu0 }
 0x199   :  { %v204_v10 = vadd.f32 %v1573_v58, %v203_v9  ;;  %v359_v9 = vld [vmem:[#allocation2 + $0x10] sm:$0xff] }
 0x19b   :  { %216 = vst.msk [vmem:[#allocation2 + $0x30] sm:$0xff] %vm209_vm11, %v204_v10 }
 0x1e5   :  { %v206_v11 = vpop.f32.mrf.mxu0 }
 0x1e6   :  { %v207_v12 = vadd.f32 %v1573_v58, %v206_v11 }
 0x1e8   :  { %217 = vst.msk [vmem:[#allocation2 + $0x38] sm:$0xff] %vm209_vm11, %v207_v12 }
 0x1ed   :  { %v245_v15 = vpop.f32.mrf.mxu0 }
 0x1ee   :  { %v246_v16 = vadd.f32 %v1850_v14, %v245_v15 }
 0x1f0   :  { %269 = vrot.lane.b32.xlu1 %v246_v16, %s1678_s13  ;;  %v248_v18 = vadd.f32 %v246_v16, %v218_v17 }
 0x1f2   :  { %v1498_v19 = vmul.f32 -1.442695, %v248_v18 }
 0x1f4   :  { %1578 = vpow2.f32 %v1498_v19 }
 0x1fa   :  { %v1579_v20 = vpop.eup %1578 }
 0x1fb   :  { %v252_v21 = vadd.f32 1.0, %v1579_v20 }
 0x1fd   :  { %1580 = vrcp.f32 %v252_v21  ;;  %v264_v27 = vand.u32 2147483648, %v252_v21  ;;  %vm258_vm13 = vweird.f32 %v252_v21  ;;  %v262_v28 = vand.u32 2147483647, %v252_v21 }
 0x1ff   :  { %v265_v30 = vor.u32 1.1754944e-38, %v264_v27  ;;  %vm263_vm15 = vcmp.eq.f32.partialorder %v262_v28, 8.507059e+37 }
 0x203   :  { %v1581_v22 = vpop.eup %1580 }
 0x204   :  { %v254_v23 = vmul.f32 %v1581_v22, %v252_v21  ;;  %vm259_vm12 = vweird.f32 %v1581_v22 }
 0x205   :  { %vm260_vm14 = vmor %vm258_vm13, %vm259_vm12 }
 0x206   :  { %v255_v24 = vsub.f32 1.0, %v254_v23 }
 0x208   :  { %v256_v25 = vmul.f32 %v1581_v22, %v255_v24 }
 0x20a   :  { %v257_v26 = vadd.f32 %v1581_v22, %v256_v25 }
 0x20c   :  { %v261_v29 = vsel %vm260_vm14, %v1581_v22, %v257_v26 }
 0x20d   :  { %v266_v32 = vsel %vm263_vm15, %v265_v30, %v261_v29 }
 0x20e   :  { %v279_v37 = vsub.f32 1.0, %v266_v32  ;;  %v285_v39 = vmul.f32 0.0, %v266_v32 }
 0x262   :  { %v270_v31 = vpop.permute.xlu1 %269 }
 0x263   :  { %v272_v33 = vmul.f32 %v270_v31, %v266_v32 }
 0x265   :  { %274 = vrot.lane.b32.xlu2 %v272_v33, %s1679_s14 }
 0x2bf   :  { %v275_v34 = vpop.permute.xlu2 %274 }
 0x2c0   :  { %v277_v35 = vadd.f32 %v275_v34, %v218_v17 }
 0x2c2   :  { %1582 = vtanh.f32 %v277_v35 }
 0x2c8   :  { %v1583_v36 = vpop.eup %1582 }
 0x2c9   :  { %281 = vrot.lane.b32.xlu0 %v1583_v36, %s1680_s15 }
 0x33b   :  { %v282_v38 = vpop.permute.xlu0 %281 }
 0x33c   :  { %v284_v40 = vmul.f32 %v282_v38, %v279_v37 }
 0x33e   :  { %v286_v41 = vadd.f32 %v285_v39, %v284_v40  ;;  %v426_v39 = vld [vmem:[#allocation2 + $0x18] sm:$0xff] }
 0x340   :  { %288 = vrot.lane.b32.xlu1 %v286_v41, %s1680_s15 }
 0x3b2   :  { %v289_v42 = vpop.permute.xlu1 %288 }
 0x3b3   :  { %291 = vst.msk [vmem:[#allocation4] sm:$0xff] %vm220_vm0, %v289_v42  ;;  %1500 = vmatmul.msk.f32.vlgmr.msra.gmra.mxu2 %vm220_vm0, %v289_v42 }
 0x3b4   :  { %1517 = vmatpush.msk.msra.mxu2 %vm224_vm10, %v1782_v43 }
 0x3b6   :  { %712 = vmatpush.msra.mxu2 %v1787_v44 }
 0x436   :  { %v312_v45 = vpop.f32.mrf.mxu2 }
 0x437   :  { %v313_v46 = vadd.f32 %v1850_v14, %v312_v45 }
 0x439   :  { %336 = vrot.lane.b32.xlu2 %v313_v46, %s1678_s13  ;;  %v315_v48 = vadd.f32 %v313_v46, %v292_v47 }
 0x43b   :  { %v1501_v49 = vmul.f32 -1.442695, %v315_v48 }
 0x43d   :  { %1584 = vpow2.f32 %v1501_v49 }
 0x443   :  { %v1585_v50 = vpop.eup %1584 }
 0x444   :  { %v319_v51 = vadd.f32 1.0, %v1585_v50 }
 0x446   :  { %1586 = vrcp.f32 %v319_v51  ;;  %v331_v43 = vand.u32 2147483648, %v319_v51  ;;  %vm325_vm2 = vweird.f32 %v319_v51  ;;  %v329_v44 = vand.u32 2147483647, %v319_v51 }
 0x448   :  { %v332_v58 = vor.u32 1.1754944e-38, %v331_v43  ;;  %vm330_vm4 = vcmp.eq.f32.partialorder %v329_v44, 8.507059e+37 }
 0x44c   :  { %v1587_v52 = vpop.eup %1586 }
 0x44d   :  { %v321_v53 = vmul.f32 %v1587_v52, %v319_v51  ;;  %vm326_vm1 = vweird.f32 %v1587_v52 }
 0x44e   :  { %vm327_vm3 = vmor %vm325_vm2, %vm326_vm1 }
 0x44f   :  { %v322_v54 = vsub.f32 1.0, %v321_v53 }
 0x451   :  { %v323_v55 = vmul.f32 %v1587_v52, %v322_v54 }
 0x453   :  { %v324_v56 = vadd.f32 %v1587_v52, %v323_v55 }
 0x455   :  { %v328_v57 = vsel %vm327_vm3, %v1587_v52, %v324_v56 }
 0x456   :  { %v333_v60 = vsel %vm330_vm4, %v332_v58, %v328_v57 }
 0x457   :  { %v346_v1 = vsub.f32 1.0, %v333_v60  ;;  %v352_v3 = vmul.f32 %v333_v60, %v286_v41 }
 0x493   :  { %v337_v59 = vpop.permute.xlu2 %336 }
 0x494   :  { %v339_v61 = vmul.f32 %v337_v59, %v333_v60 }
 0x496   :  { %341 = vrot.lane.b32.xlu0 %v339_v61, %s1679_s14 }
 0x508   :  { %v342_v62 = vpop.permute.xlu0 %341 }
 0x509   :  { %v344_v63 = vadd.f32 %v342_v62, %v292_v47 }
 0x50b   :  { %1588 = vtanh.f32 %v344_v63 }
 0x511   :  { %v1589_v0 = vpop.eup %1588 }
 0x512   :  { %348 = vrot.lane.b32.xlu1 %v1589_v0, %s1680_s15 }
 0x584   :  { %v349_v2 = vpop.permute.xlu1 %348 }
 0x585   :  { %v351_v4 = vmul.f32 %v349_v2, %v346_v1 }
 0x587   :  { %v353_v5 = vadd.f32 %v352_v3, %v351_v4  ;;  %v493_v3 = vld [vmem:[#allocation2 + $0x20] sm:$0xff] }
 0x589   :  { %355 = vrot.lane.b32.xlu2 %v353_v5, %s1680_s15 }
 0x5e3   :  { %v356_v6 = vpop.permute.xlu2 %355 }
 0x5e4   :  { %358 = vst.msk [vmem:[#allocation4 + $0x8] sm:$0xff] %vm220_vm0, %v356_v6  ;;  %1503 = vmatmul.msk.f32.vlgmr.msra.gmra.mxu3 %vm220_vm0, %v356_v6 }
 0x667   :  { %v379_v7 = vpop.f32.mrf.mxu3 }
 0x668   :  { %v380_v8 = vadd.f32 %v1850_v14, %v379_v7 }
 0x66a   :  { %403 = vrot.lane.b32.xlu0 %v380_v8, %s1678_s13  ;;  %v382_v10 = vadd.f32 %v380_v8, %v359_v9 }
 0x66c   :  { %v1504_v11 = vmul.f32 -1.442695, %v382_v10 }
 0x66e   :  { %1590 = vpow2.f32 %v1504_v11 }
 0x674   :  { %v1591_v12 = vpop.eup %1590 }
 0x675   :  { %v386_v15 = vadd.f32 1.0, %v1591_v12 }
 0x677   :  { %1592 = vrcp.f32 %v386_v15  ;;  %v398_v21 = vand.u32 2147483648, %v386_v15  ;;  %vm392_vm6 = vweird.f32 %v386_v15  ;;  %v396_v22 = vand.u32 2147483647, %v386_v15 }
 0x679   :  { %v399_v24 = vor.u32 1.1754944e-38, %v398_v21  ;;  %vm397_vm8 = vcmp.eq.f32.partialorder %v396_v22, 8.507059e+37 }
 0x67d   :  { %v1593_v16 = vpop.eup %1592 }
 0x67e   :  { %v388_v17 = vmul.f32 %v1593_v16, %v386_v15  ;;  %vm393_vm5 = vweird.f32 %v1593_v16 }
 0x67f   :  { %vm394_vm7 = vmor %vm392_vm6, %vm393_vm5 }
 0x680   :  { %v389_v18 = vsub.f32 1.0, %v388_v17 }
 0x682   :  { %v390_v19 = vmul.f32 %v1593_v16, %v389_v18 }
 0x684   :  { %v391_v20 = vadd.f32 %v1593_v16, %v390_v19 }
 0x686   :  { %v395_v23 = vsel %vm394_vm7, %v1593_v16, %v391_v20 }
 0x687   :  { %v400_v26 = vsel %vm397_vm8, %v399_v24, %v395_v23 }
 0x688   :  { %v413_v31 = vsub.f32 1.0, %v400_v26  ;;  %v419_v33 = vmul.f32 %v400_v26, %v353_v5 }
 0x6dc   :  { %v404_v25 = vpop.permute.xlu0 %403 }
 0x6dd   :  { %v406_v27 = vmul.f32 %v404_v25, %v400_v26 }
 0x6df   :  { %408 = vrot.lane.b32.xlu1 %v406_v27, %s1679_s14 }
 0x751   :  { %v409_v28 = vpop.permute.xlu1 %408 }
 0x752   :  { %v411_v29 = vadd.f32 %v409_v28, %v359_v9 }
 0x754   :  { %1594 = vtanh.f32 %v411_v29 }
 0x75a   :  { %v1595_v30 = vpop.eup %1594 }
 0x75b   :  { %415 = vrot.lane.b32.xlu2 %v1595_v30, %s1680_s15  ;;  %v25_v30 = vld [vmem:[%s2137_s2 + $0x48] sm:$0x3] }
 0x75c   :  { %1520 = vmatpush.msk.msra.mxu3 %vm224_vm10, %v25_v30 }
 0x7b5   :  { %v416_v32 = vpop.permute.xlu2 %415 }
 0x7b6   :  { %v418_v34 = vmul.f32 %v416_v32, %v413_v31  ;;  %v24_v31 = vld [vmem:[%s2137_s2 + $0x40] sm:$0xff] }
 0x7b7   :  { %812 = vmatpush.msra.mxu3 %v24_v31 }
 0x7b8   :  { %v420_v35 = vadd.f32 %v419_v33, %v418_v34  ;;  %v761_v33 = vld [vmem:[#allocation4] sm:$0xff]  ;;  %v762_v34 = vld [vmem:[#allocation4 + $0x8] sm:$0xff] }
 0x7ba   :  { %422 = vrot.lane.b32.xlu0 %v420_v35, %s1680_s15 }
 0x82c   :  { %v423_v36 = vpop.permute.xlu0 %422 }
 0x82d   :  { %425 = vst.msk [vmem:[#allocation4 + $0x10] sm:$0xff] %vm220_vm0, %v423_v36  ;;  %1506 = vmatmul.msk.f32.vlgmr.msra.gmra.mxu1 %vm220_vm0, %v423_v36 }
 0x8aa   :  { %v446_v37 = vpop.f32.mrf.mxu1 }
 0x8ab   :  { %v447_v38 = vadd.f32 %v1850_v14, %v446_v37 }
 0x8ad   :  { %470 = vrot.lane.b32.xlu1 %v447_v38, %s1678_s13  ;;  %v449_v40 = vadd.f32 %v447_v38, %v426_v39 }
 0x8af   :  { %v1507_v41 = vmul.f32 -1.442695, %v449_v40  ;;  %v1910_v40 = vld [vmem:[%s2137_s2 + $0x72] ss:$0 sm:$0xff] }
 0x8b1   :  { %1596 = vpow2.f32 %v1507_v41 }
 0x8b7   :  { %v1597_v42 = vpop.eup %1596 }
 0x8b8   :  { %v453_v45 = vadd.f32 1.0, %v1597_v42 }
 0x8ba   :  { %1598 = vrcp.f32 %v453_v45  ;;  %v465_v51 = vand.u32 2147483648, %v453_v45  ;;  %vm459_vm12 = vweird.f32 %v453_v45  ;;  %v463_v52 = vand.u32 2147483647, %v453_v45 }
 0x8bc   :  { %v466_v54 = vor.u32 1.1754944e-38, %v465_v51  ;;  %vm464_vm14 = vcmp.eq.f32.partialorder %v463_v52, 8.507059e+37 }
 0x8c0   :  { %v1599_v46 = vpop.eup %1598 }
 0x8c1   :  { %v455_v47 = vmul.f32 %v1599_v46, %v453_v45  ;;  %vm460_vm9 = vweird.f32 %v1599_v46 }
 0x8c2   :  { %vm461_vm13 = vmor %vm459_vm12, %vm460_vm9 }
 0x8c3   :  { %v456_v48 = vsub.f32 1.0, %v455_v47 }
 0x8c5   :  { %v457_v49 = vmul.f32 %v1599_v46, %v456_v48 }
 0x8c7   :  { %v458_v50 = vadd.f32 %v1599_v46, %v457_v49 }
 0x8c9   :  { %v462_v53 = vsel %vm461_vm13, %v1599_v46, %v458_v50 }
 0x8ca   :  { %v467_v56 = vsel %vm464_vm14, %v466_v54, %v462_v53  ;;  %v560_v53 = vld [vmem:[#allocation2 + $0x28] sm:$0xff] }
 0x8cb   :  { %v480_v59 = vsub.f32 1.0, %v467_v56  ;;  %v486_v61 = vmul.f32 %v467_v56, %v420_v35  ;;  %v763_v35 = vld [vmem:[#allocation4 + $0x10] sm:$0xff] }
 0x91f   :  { %v471_v55 = vpop.permute.xlu1 %470 }
 0x920   :  { %v473_v43 = vmul.f32 %v471_v55, %v467_v56 }
 0x922   :  { %475 = vrot.lane.b32.xlu2 %v473_v43, %s1679_s14 }
 0x97c   :  { %v476_v44 = vpop.permute.xlu2 %475 }
 0x97d   :  { %v478_v57 = vadd.f32 %v476_v44, %v426_v39 }
 0x97f   :  { %1600 = vtanh.f32 %v478_v57 }
 0x985   :  { %v1601_v58 = vpop.eup %1600 }
 0x986   :  { %482 = vrot.lane.b32.xlu0 %v1601_v58, %s1680_s15 }
 0x9f8   :  { %v483_v60 = vpop.permute.xlu0 %482 }
 0x9f9   :  { %v485_v62 = vmul.f32 %v483_v60, %v480_v59 }
 0x9fb   :  { %v487_v63 = vadd.f32 %v486_v61, %v485_v62 }
 0x9fd   :  { %489 = vrot.lane.b32.xlu1 %v487_v63, %s1680_s15 }
 0xa6f   :  { %v490_v0 = vpop.permute.xlu1 %489 }
 0xa70   :  { %492 = vst.msk [vmem:[#allocation4 + $0x18] sm:$0xff] %vm220_vm0, %v490_v0  ;;  %1509 = vmatmul.msk.f32.vlgmr.msrb.gmra.mxu2 %vm220_vm0, %v490_v0 }
 0xa77   :  { %v764_v36 = vld [vmem:[#allocation4 + $0x18] sm:$0xff] }
 0xaf3   :  { %v513_v1 = vpop.f32.mrf.mxu2 }
 0xaf4   :  { %v514_v2 = vadd.f32 %v1850_v14, %v513_v1 }
 0xaf6   :  { %537 = vrot.lane.b32.xlu2 %v514_v2, %s1678_s13  ;;  %v516_v4 = vadd.f32 %v514_v2, %v493_v3 }
 0xaf8   :  { %v1510_v5 = vmul.f32 -1.442695, %v516_v4 }
 0xafa   :  { %1602 = vpow2.f32 %v1510_v5 }
 0xb00   :  { %v1603_v6 = vpop.eup %1602 }
 0xb01   :  { %v520_v7 = vadd.f32 1.0, %v1603_v6 }
 0xb03   :  { %1604 = vrcp.f32 %v520_v7  ;;  %v532_v15 = vand.u32 2147483648, %v520_v7  ;;  %vm526_vm1 = vweird.f32 %v520_v7  ;;  %v530_v16 = vand.u32 2147483647, %v520_v7 }
 0xb05   :  { %v533_v18 = vor.u32 1.1754944e-38, %v532_v15  ;;  %vm531_vm3 = vcmp.eq.f32.partialorder %v530_v16, 8.507059e+37  ;;  %v1937_v15 = vld [vmem:[%s2137_s2 + $0x50] sm:$0xff] }
 0xb09   :  { %v1605_v8 = vpop.eup %1604 }
 0xb0a   :  { %v522_v9 = vmul.f32 %v1605_v8, %v520_v7  ;;  %vm527_vm15 = vweird.f32 %v1605_v8 }
 0xb0b   :  { %vm528_vm2 = vmor %vm526_vm1, %vm527_vm15 }
 0xb0c   :  { %v523_v10 = vsub.f32 1.0, %v522_v9 }
 0xb0e   :  { %v524_v11 = vmul.f32 %v1605_v8, %v523_v10 }
 0xb10   :  { %v525_v12 = vadd.f32 %v1605_v8, %v524_v11 }
 0xb12   :  { %v529_v17 = vsel %vm528_vm2, %v1605_v8, %v525_v12  ;;  %v1932_v12 = vld [vmem:[%s2137_s2 + $0x58] sm:$0x3] }
 0xb13   :  { %v534_v20 = vsel %vm531_vm3, %v533_v18, %v529_v17  ;;  %1529 = vmatpush.msk.msra.mxu1 %vm224_vm10, %v1932_v12  ;;  %1531 = vmatpush.msk.msrb.mxu2 %vm224_vm10, %v1932_v12 }
 0xb14   :  { %v547_v25 = vsub.f32 1.0, %v534_v20  ;;  %v553_v27 = vmul.f32 %v534_v20, %v487_v63 }
 0xb15   :  { %866 = vmatpush.msra.mxu1 %v1937_v15  ;;  %933 = vmatpush.msrb.mxu2 %v1937_v15 }
 0xb50   :  { %v538_v19 = vpop.permute.xlu2 %537 }
 0xb51   :  { %v540_v21 = vmul.f32 %v538_v19, %v534_v20  ;;  %v1960_v20 = vld [vmem:[%s2137_s2 + $0x73] ss:$0 sm:$0xff] }
 0xb53   :  { %542 = vrot.lane.b32.xlu0 %v540_v21, %s1679_s14 }
 0xbc5   :  { %v543_v22 = vpop.permute.xlu0 %542 }
 0xbc6   :  { %v545_v23 = vadd.f32 %v543_v22, %v493_v3 }
 0xbc8   :  { %1606 = vtanh.f32 %v545_v23 }
 0xbce   :  { %v1607_v24 = vpop.eup %1606 }
 0xbcf   :  { %549 = vrot.lane.b32.xlu1 %v1607_v24, %s1680_s15 }
 0xc41   :  { %v550_v26 = vpop.permute.xlu1 %549 }
 0xc42   :  { %v552_v28 = vmul.f32 %v550_v26, %v547_v25 }
 0xc44   :  { %v1887_v29 = vadd.f32 %v553_v27, %v552_v28  ;;  %v627_v27 = vld [vmem:[#allocation2 + $0x30] sm:$0xff] }
 0xc46   :  { %556 = vrot.lane.b32.xlu2 %v1887_v29, %s1680_s15 }
 0xca0   :  { %v557_v32 = vpop.permute.xlu2 %556 }
 0xca1   :  { %559 = vst.msk [vmem:[#allocation4 + $0x20] sm:$0xff] %vm220_vm0, %v557_v32  ;;  %1512 = vmatmul.msk.f32.vlgmr.msrb.gmra.mxu3 %vm220_vm0, %v557_v32 }
 0xca8   :  { %v765_v37 = vld [vmem:[#allocation4 + $0x20] sm:$0xff] }
 0xca9   :  { %1521 = vmatmul.msk.f32.vlgmr.msra.gmra.mxu3 %vm220_vm0, %v761_v33 }
 0xcb1   :  { %1522 = vmatmul.msk.f32.gmra.mxu3 %vm220_vm0, %v762_v34 }
 0xcb9   :  { %1523 = vmatmul.msk.f32.gmra.mxu3 %vm220_vm0, %v763_v35 }
 0xcc1   :  { %1524 = vmatmul.msk.f32.gmra.mxu3 %vm220_vm0, %v764_v36 }
 0xcc9   :  { %1525 = vmatmul.msk.f32.gmra.mxu3 %vm220_vm0, %v765_v37 }
 0xd24   :  { %v580_v38 = vpop.f32.mrf.mxu3 }
 0xd25   :  { %v581_v39 = vadd.f32 %v1850_v14, %v580_v38 }
 0xd27   :  { %604 = vrot.lane.b32.xlu0 %v581_v39, %s1678_s13  ;;  %v583_v54 = vadd.f32 %v581_v39, %v560_v53 }
 0xd29   :  { %v1513_v55 = vmul.f32 -1.442695, %v583_v54 }
 0xd2b   :  { %1608 = vpow2.f32 %v1513_v55 }
 0xd2c   :  { %v814_v41 = vpop.f32.mrf.mxu3 }
 0xd2d   :  { %v815_v42 = vadd.f32 %v1910_v40, %v814_v41 }
 0xd2f   :  { %838 = vst.msk [vmem:[#allocation3] sm:$0xff] %vm209_vm11, %v815_v42 }
 0xd31   :  { %v1609_v56 = vpop.eup %1608 }
 0xd32   :  { %v587_v43 = vadd.f32 1.0, %v1609_v56 }
 0xd34   :  { %v817_v45 = vpop.f32.mrf.mxu3  ;;  %1610 = vrcp.f32 %v587_v43  ;;  %v599_v61 = vand.u32 2147483648, %v587_v43  ;;  %vm593_vm5 = vweird.f32 %v587_v43  ;;  %v597_v62 = vand.u32 2147483647, %v587_v43 }
 0xd35   :  { %v818_v46 = vadd.f32 %v1910_v40, %v817_v45 }
 0xd36   :  { %v600_v0 = vor.u32 1.1754944e-38, %v599_v61  ;;  %vm598_vm7 = vcmp.eq.f32.partialorder %v597_v62, 8.507059e+37  ;;  %v846_v24 = vld [vmem:[#allocation3] sm:$0xff] }
 0xd37   :  { %839 = vst.msk [vmem:[#allocation3 + $0x8] sm:$0xff] %vm209_vm11, %v818_v46 }
 0xd3a   :  { %v1611_v44 = vpop.eup %1610 }
 0xd3b   :  { %v589_v57 = vmul.f32 %v1611_v44, %v587_v43  ;;  %vm594_vm4 = vweird.f32 %v1611_v44 }
 0xd3c   :  { %v820_v47 = vpop.f32.mrf.mxu3  ;;  %vm595_vm6 = vmor %vm593_vm5, %vm594_vm4 }
 0xd3d   :  { %v821_v48 = vadd.f32 %v1910_v40, %v820_v47  ;;  %v590_v58 = vsub.f32 1.0, %v589_v57 }
 0xd3f   :  { %840 = vst.msk [vmem:[#allocation3 + $0x10] sm:$0xff] %vm209_vm11, %v821_v48  ;;  %v591_v59 = vmul.f32 %v1611_v44, %v590_v58 }
 0xd41   :  { %v592_v60 = vadd.f32 %v1611_v44, %v591_v59 }
 0xd43   :  { %v596_v63 = vsel %vm595_vm6, %v1611_v44, %v592_v60 }
 0xd44   :  { %v823_v49 = vpop.f32.mrf.mxu3  ;;  %v601_v2 = vsel %vm598_vm7, %v600_v0, %v596_v63 }
 0xd45   :  { %v824_v50 = vadd.f32 %v1910_v40, %v823_v49  ;;  %v614_v7 = vsub.f32 1.0, %v601_v2  ;;  %v620_v9 = vmul.f32 %v601_v2, %v1887_v29 }
 0xd47   :  { %841 = vst.msk [vmem:[#allocation3 + $0x18] sm:$0xff] %vm209_vm11, %v824_v50 }
 0xd4c   :  { %v826_v51 = vpop.f32.mrf.mxu3 }
 0xd4d   :  { %v827_v52 = vadd.f32 %v1910_v40, %v826_v51 }
 0xd4f   :  { %842 = vst.msk [vmem:[#allocation3 + $0x20] sm:$0xff] %vm209_vm11, %v827_v52 }
 0xd99   :  { %v605_v1 = vpop.permute.xlu0 %604 }
 0xd9a   :  { %v607_v3 = vmul.f32 %v605_v1, %v601_v2 }
 0xd9c   :  { %609 = vrot.lane.b32.xlu1 %v607_v3, %s1679_s14 }
 0xe0e   :  { %v610_v4 = vpop.permute.xlu1 %609 }
 0xe0f   :  { %v612_v5 = vadd.f32 %v610_v4, %v560_v53 }
 0xe11   :  { %1612 = vtanh.f32 %v612_v5 }
 0xe17   :  { %v1613_v6 = vpop.eup %1612 }
 0xe18   :  { %616 = vrot.lane.b32.xlu2 %v1613_v6, %s1680_s15 }
 0xe72   :  { %v617_v8 = vpop.permute.xlu2 %616 }
 0xe73   :  { %v619_v10 = vmul.f32 %v617_v8, %v614_v7 }
 0xe75   :  { %v1925_v11 = vadd.f32 %v620_v9, %v619_v10 }
 0xe77   :  { %623 = vrot.lane.b32.xlu0 %v1925_v11, %s1680_s15 }
 0xee9   :  { %v624_v16 = vpop.permute.xlu0 %623 }
 0xeea   :  { %626 = vst.msk [vmem:[#allocation4 + $0x28] sm:$0xff] %vm220_vm0, %v624_v16  ;;  %1515 = vmatmul.msk.f32.vlgmr.msrb.gmra.mxu1 %vm220_vm0, %v624_v16 }
 0xeeb   :  { %1534 = vmatpush.msk.msrb.mxu1 %vm224_vm10, %v1932_v12 }
 0xeed   :  { %1000 = vmatpush.msrb.mxu1 %v1937_v15 }
 0xef1   :  { %v766_v17 = vld [vmem:[#allocation4 + $0x28] sm:$0xff] }
 0xef2   :  { %1526 = vmatmul.msk.f32.gmra.mxu3 %vm220_vm0, %v766_v17  ;;  %867 = vmatmul.f32.vlgmr.msra.gmra.mxu1 %v1676_v13 }
 0xef3   :  { %1540 = vmatpush.msk.msra.mxu1 %vm224_vm10, %v1932_v12 }
 0xef5   :  { %1134 = vmatpush.msra.mxu1 %v1937_v15 }
 0xf67   :  { %v647_v18 = vpop.f32.mrf.mxu1 }
 0xf68   :  { %v648_v19 = vadd.f32 %v1850_v14, %v647_v18 }
 0xf6a   :  { %671 = vrot.lane.b32.xlu1 %v648_v19, %s1678_s13  ;;  %v650_v28 = vadd.f32 %v648_v19, %v627_v27 }
 0xf6c   :  { %v1516_v30 = vmul.f32 -1.442695, %v650_v28 }
 0xf6f   :  { %v868_v21 = vpop.f32.mrf.mxu1 }
 0xf70   :  { %v869_v22 = vadd.f32 %v1960_v20, %v868_v21 }
 0xf72   :  { %892 = vrot.lane.b32.xlu2 %v869_v22, %s1678_s13  ;;  %v871_v25 = vadd.f32 %v869_v22, %v846_v24 }
 0xf74   :  { %v1530_v14 = vmul.f32 -1.442695, %v871_v25 }
 0xf75   :  { %v829_v13 = vpop.f32.mrf.mxu3 }
 0xf76   :  { %v830_v23 = vadd.f32 %v1910_v40, %v829_v13  ;;  %1614 = vpow2.f32 %v1530_v14  ;;  %v915_v13 = vld [vmem:[#allocation3 + $0x8] sm:$0xff] }
 0xf78   :  { %843 = vst.msk [vmem:[#allocation3 + $0x28] sm:$0xff] %vm209_vm11, %v830_v23 }
 0xf7c   :  { %v1615_v26 = vpop.eup %1614 }
 0xf7d   :  { %v875_v29 = vadd.f32 1.0, %v1615_v26 }
 0xf7f   :  { %1616 = vrcp.f32 %v875_v29  ;;  %v887_v39 = vand.u32 2147483648, %v875_v29  ;;  %vm881_vm9 = vweird.f32 %v875_v29  ;;  %v885_v41 = vand.u32 2147483647, %v875_v29 }
 0xf80   :  { %1618 = vpow2.f32 %v1516_v30 }
 0xf81   :  { %v888_v46 = vor.u32 1.1754944e-38, %v887_v39  ;;  %vm886_vm13 = vcmp.eq.f32.partialorder %v885_v41, 8.507059e+37 }
 0xf85   :  { %v1617_v31 = vpop.eup %1616 }
 0xf86   :  { %v1619_v32 = vpop.eup %1618  ;;  %v877_v33 = vmul.f32 %v1617_v31, %v875_v29  ;;  %vm882_vm8 = vweird.f32 %v1617_v31 }
 0xf87   :  { %v654_v34 = vadd.f32 1.0, %v1619_v32  ;;  %vm883_vm12 = vmor %vm881_vm9, %vm882_vm8 }
 0xf88   :  { %v878_v35 = vsub.f32 1.0, %v877_v33 }
 0xf89   :  { %1620 = vrcp.f32 %v654_v34  ;;  %v666_v53 = vand.u32 2147483648, %v654_v34  ;;  %vm660_vm15 = vweird.f32 %v654_v34  ;;  %v664_v54 = vand.u32 2147483647, %v654_v34 }
 0xf8a   :  { %v879_v36 = vmul.f32 %v1617_v31, %v878_v35 }
 0xf8b   :  { %v667_v56 = vor.u32 1.1754944e-38, %v666_v53  ;;  %vm665_vm2 = vcmp.eq.f32.partialorder %v664_v54, 8.507059e+37 }
 0xf8c   :  { %v880_v37 = vadd.f32 %v1617_v31, %v879_v36 }
 0xf8e   :  { %v884_v42 = vsel %vm883_vm12, %v1617_v31, %v880_v37 }
 0xf8f   :  { %v1621_v38 = vpop.eup %1620  ;;  %v889_v48 = vsel %vm886_vm13, %v888_v46, %v884_v42 }
 0xf90   :  { %v656_v45 = vmul.f32 %v1621_v38, %v654_v34  ;;  %vm661_vm14 = vweird.f32 %v1621_v38  ;;  %v902_v5 = vsub.f32 1.0, %v889_v48  ;;  %v908_v7 = vmul.f32 0.0, %v889_v48 }
 0xf91   :  { %vm662_vm1 = vmor %vm660_vm15, %vm661_vm14 }
 0xf92   :  { %v657_v50 = vsub.f32 1.0, %v656_v45 }
 0xf94   :  { %v658_v51 = vmul.f32 %v1621_v38, %v657_v50 }
 0xf96   :  { %v659_v52 = vadd.f32 %v1621_v38, %v658_v51 }
 0xf98   :  { %v663_v55 = vsel %vm662_vm1, %v1621_v38, %v659_v52  ;;  %v982_v52 = vld [vmem:[#allocation3 + $0x10] sm:$0xff] }
 0xf99   :  { %v668_v44 = vsel %vm665_vm2, %v667_v56, %v663_v55 }
 0xf9a   :  { %v681_v0 = vsub.f32 1.0, %v668_v44  ;;  %v687_v2 = vmul.f32 %v668_v44, %v1925_v11 }
 0xfcc   :  { %v893_v47 = vpop.permute.xlu2 %892 }
 0xfcd   :  { %v895_v49 = vmul.f32 %v893_v47, %v889_v48 }
 0xfcf   :  { %897 = vrot.lane.b32.xlu1 %v895_v49, %s1679_s14 }
 0xfdc   :  { %v672_v43 = vpop.permute.xlu1 %671 }
 0xfdd   :  { %v674_v57 = vmul.f32 %v672_v43, %v668_v44 }
 0xfdf   :  { %676 = vrot.lane.b32.xlu0 %v674_v57, %s1679_s14 }
0x1041   :  { %v898_v58 = vpop.permute.xlu1 %897 }
0x1042   :  { %v900_v59 = vadd.f32 %v898_v58, %v846_v24 }
0x1044   :  { %1622 = vtanh.f32 %v900_v59 }
0x104a   :  { %v1623_v60 = vpop.eup %1622 }
0x104b   :  { %904 = vrot.lane.b32.xlu0 %v1623_v60, %s1680_s15 }
0x1051   :  { %v677_v61 = vpop.permute.xlu0 %676 }
0x1052   :  { %v679_v62 = vadd.f32 %v677_v61, %v627_v27 }
0x1054   :  { %1624 = vtanh.f32 %v679_v62 }
0x105a   :  { %v1625_v63 = vpop.eup %1624 }
0x105b   :  { %683 = vrot.lane.b32.xlu2 %v1625_v63, %s1680_s15 }
0x10b5   :  { %v684_v1 = vpop.permute.xlu2 %683 }
0x10b6   :  { %v686_v3 = vmul.f32 %v684_v1, %v681_v0 }
0x10b8   :  { %v1971_v4 = vadd.f32 %v687_v2, %v686_v3 }
0x10ba   :  { %690 = vrot.lane.b32.xlu1 %v1971_v4, %s1680_s15 }
0x10bd   :  { %v905_v6 = vpop.permute.xlu0 %904 }
0x10be   :  { %v907_v8 = vmul.f32 %v905_v6, %v902_v5 }
0x10c0   :  { %v909_v9 = vadd.f32 %v908_v7, %v907_v8 }
0x10c2   :  { %911 = vrot.lane.b32.xlu2 %v909_v9, %s1680_s15 }
0x111c   :  { %v912_v10 = vpop.permute.xlu2 %911 }
0x111d   :  { %914 = vst.msk [vmem:[#allocation5] sm:$0xff] %vm220_vm0, %v912_v10 }
0x112c   :  { %v691_v16 = vpop.permute.xlu1 %690 }
0x112d   :  { %693 = vst.msk [vmem:[#allocation4 + $0x30] sm:$0xff] %vm220_vm0, %v691_v16  ;;  %1518 = vmatmul.msk.f32.vlgmr.msra.gmra.mxu2 %vm220_vm0, %v691_v16 }
0x112e   :  { %1537 = vmatpush.msk.msra.mxu2 %vm224_vm10, %v1932_v12 }
0x1130   :  { %1067 = vmatpush.msra.mxu2 %v1937_v15 }
0x1134   :  { %v767_v11 = vld [vmem:[#allocation4 + $0x30] sm:$0xff] }
0x1135   :  { %1527 = vmatmul.msk.f32.gmra.mxu3 %vm220_vm0, %v767_v11  ;;  %1532 = vmatmul.msk.f32.vlgmr.msrb.gmra.mxu2 %vm220_vm0, %v912_v10 }
0x1136   :  { %1543 = vmatpush.msk.msrb.mxu2 %vm224_vm10, %v1932_v12 }
0x1138   :  { %1201 = vmatpush.msrb.mxu2 %v1937_v15 }
0x11b0   :  { %v1987_v17 = vpop.f32.mrf.mxu2 }
0x11b8   :  { %v832_v18 = vpop.f32.mrf.mxu3  ;;  %v935_v19 = vpop.f32.mrf.mxu2 }
0x11b9   :  { %v833_v21 = vadd.f32 %v1910_v40, %v832_v18  ;;  %v936_v22 = vadd.f32 %v1960_v20, %v935_v19 }
0x11bb   :  { %844 = vst.msk [vmem:[#allocation3 + $0x30] sm:$0xff] %vm209_vm11, %v833_v21  ;;  %959 = vrot.lane.b32.xlu0 %v936_v22, %s1678_s13  ;;  %v938_v23 = vadd.f32 %v936_v22, %v915_v13  ;;  %v1049_v21 = vld [vmem:[#allocation3 + $0x18] sm:$0xff] }
0x11bd   :  { %v1533_v24 = vmul.f32 -1.442695, %v938_v23 }
0x11bf   :  { %1626 = vpow2.f32 %v1533_v24 }
0x11c5   :  { %v1627_v25 = vpop.eup %1626 }
0x11c6   :  { %v942_v14 = vadd.f32 1.0, %v1627_v25 }
0x11c8   :  { %1628 = vrcp.f32 %v942_v14  ;;  %v954_v31 = vand.u32 2147483648, %v942_v14  ;;  %vm948_vm4 = vweird.f32 %v942_v14  ;;  %v952_v32 = vand.u32 2147483647, %v942_v14 }
0x11ca   :  { %v955_v34 = vor.u32 1.1754944e-38, %v954_v31  ;;  %vm953_vm6 = vcmp.eq.f32.partialorder %v952_v32, 8.507059e+37 }
0x11ce   :  { %v1629_v26 = vpop.eup %1628 }
0x11cf   :  { %v944_v27 = vmul.f32 %v1629_v26, %v942_v14  ;;  %vm949_vm3 = vweird.f32 %v1629_v26 }
0x11d0   :  { %vm950_vm5 = vmor %vm948_vm4, %vm949_vm3 }
0x11d1   :  { %v945_v28 = vsub.f32 1.0, %v944_v27 }
0x11d3   :  { %v946_v29 = vmul.f32 %v1629_v26, %v945_v28 }
0x11d5   :  { %v947_v30 = vadd.f32 %v1629_v26, %v946_v29 }
0x11d7   :  { %v951_v33 = vsel %vm950_vm5, %v1629_v26, %v947_v30 }
0x11d8   :  { %v956_v36 = vsel %vm953_vm6, %v955_v34, %v951_v33 }
0x11d9   :  { %v969_v42 = vsub.f32 1.0, %v956_v36  ;;  %v975_v46 = vmul.f32 %v956_v36, %v909_v9 }
0x122d   :  { %v960_v35 = vpop.permute.xlu0 %959 }
0x122e   :  { %v962_v37 = vmul.f32 %v960_v35, %v956_v36 }
0x1230   :  { %964 = vrot.lane.b32.xlu1 %v962_v37, %s1679_s14 }
0x12a2   :  { %v965_v38 = vpop.permute.xlu1 %964 }
0x12a3   :  { %v967_v39 = vadd.f32 %v965_v38, %v915_v13 }
0x12a5   :  { %1630 = vtanh.f32 %v967_v39 }
0x12ab   :  { %v1631_v41 = vpop.eup %1630 }
0x12ac   :  { %971 = vrot.lane.b32.xlu2 %v1631_v41, %s1680_s15 }
0x1306   :  { %v972_v45 = vpop.permute.xlu2 %971 }
0x1307   :  { %v974_v47 = vmul.f32 %v972_v45, %v969_v42 }
0x1309   :  { %v976_v48 = vadd.f32 %v975_v46, %v974_v47 }
0x130b   :  { %978 = vrot.lane.b32.xlu0 %v976_v48, %s1680_s15 }
0x137d   :  { %v979_v49 = vpop.permute.xlu0 %978 }
0x137e   :  { %981 = vst.msk [vmem:[#allocation5 + $0x8] sm:$0xff] %vm220_vm0, %v979_v49  ;;  %1535 = vmatmul.msk.f32.vlgmr.msrb.gmra.mxu1 %vm220_vm0, %v979_v49 }
0x137f   :  { %1546 = vmatpush.msk.msrb.mxu1 %vm224_vm10, %v1932_v12 }
0x1381   :  { %1268 = vmatpush.msrb.mxu1 %v1937_v15 }
0x13fb   :  { %v1002_v50 = vpop.f32.mrf.mxu1 }
0x13fc   :  { %v1003_v51 = vadd.f32 %v1960_v20, %v1002_v50 }
0x13fe   :  { %1026 = vrot.lane.b32.xlu1 %v1003_v51, %s1678_s13  ;;  %v1005_v53 = vadd.f32 %v1003_v51, %v982_v52 }
0x1400   :  { %v1536_v54 = vmul.f32 -1.442695, %v1005_v53 }
0x1402   :  { %1632 = vpow2.f32 %v1536_v54 }
0x1408   :  { %v1633_v55 = vpop.eup %1632 }
0x1409   :  { %v1009_v56 = vadd.f32 1.0, %v1633_v55 }
0x140b   :  { %1634 = vrcp.f32 %v1009_v56  ;;  %v1021_v60 = vand.u32 2147483648, %v1009_v56  ;;  %vm1015_vm8 = vweird.f32 %v1009_v56  ;;  %v1019_v61 = vand.u32 2147483647, %v1009_v56 }
0x140d   :  { %v1022_v63 = vor.u32 1.1754944e-38, %v1021_v60  ;;  %vm1020_vm12 = vcmp.eq.f32.partialorder %v1019_v61, 8.507059e+37 }
0x1411   :  { %v1635_v43 = vpop.eup %1634 }
0x1412   :  { %v1011_v44 = vmul.f32 %v1635_v43, %v1009_v56  ;;  %vm1016_vm7 = vweird.f32 %v1635_v43 }
0x1413   :  { %vm1017_vm9 = vmor %vm1015_vm8, %vm1016_vm7 }
0x1414   :  { %v1012_v57 = vsub.f32 1.0, %v1011_v44 }
0x1416   :  { %v1013_v58 = vmul.f32 %v1635_v43, %v1012_v57 }
0x1418   :  { %v1014_v59 = vadd.f32 %v1635_v43, %v1013_v58 }
0x141a   :  { %v1018_v62 = vsel %vm1017_vm9, %v1635_v43, %v1014_v59 }
0x141b   :  { %v1023_v1 = vsel %vm1020_vm12, %v1022_v63, %v1018_v62 }
0x141c   :  { %v1036_v7 = vsub.f32 1.0, %v1023_v1  ;;  %v1042_v9 = vmul.f32 %v1023_v1, %v976_v48  ;;  %v1116_v48 = vld [vmem:[#allocation3 + $0x20] sm:$0xff] }
0x1470   :  { %v1027_v0 = vpop.permute.xlu1 %1026 }
0x1471   :  { %v1029_v2 = vmul.f32 %v1027_v0, %v1023_v1 }
0x1473   :  { %1031 = vrot.lane.b32.xlu2 %v1029_v2, %s1679_s14 }
0x14cd   :  { %v1032_v3 = vpop.permute.xlu2 %1031 }
0x14ce   :  { %v1034_v5 = vadd.f32 %v1032_v3, %v982_v52 }
0x14d0   :  { %1636 = vtanh.f32 %v1034_v5 }
0x14d6   :  { %v1637_v6 = vpop.eup %1636 }
0x14d7   :  { %1038 = vrot.lane.b32.xlu0 %v1637_v6, %s1680_s15 }
0x1549   :  { %v1039_v8 = vpop.permute.xlu0 %1038 }
0x154a   :  { %v1041_v10 = vmul.f32 %v1039_v8, %v1036_v7 }
0x154c   :  { %v1043_v16 = vadd.f32 %v1042_v9, %v1041_v10 }
0x154e   :  { %1045 = vrot.lane.b32.xlu1 %v1043_v16, %s1680_s15 }
0x15c0   :  { %v1046_v11 = vpop.permute.xlu1 %1045 }
0x15c1   :  { %1048 = vst.msk [vmem:[#allocation5 + $0x10] sm:$0xff] %vm220_vm0, %v1046_v11  ;;  %1538 = vmatmul.msk.f32.vlgmr.msra.gmra.mxu2 %vm220_vm0, %v1046_v11 }
0x15c2   :  { %1549 = vmatpush.msk.msra.mxu2 %vm224_vm10, %v1932_v12 }
0x15c4   :  { %1335 = vmatpush.msra.mxu2 %v1937_v15 }
0x1644   :  { %v1069_v18 = vpop.f32.mrf.mxu2 }
0x1645   :  { %v1070_v19 = vadd.f32 %v1960_v20, %v1069_v18 }
0x1647   :  { %1093 = vrot.lane.b32.xlu2 %v1070_v19, %s1678_s13  ;;  %v1072_v22 = vadd.f32 %v1070_v19, %v1049_v21 }
0x1649   :  { %v1539_v13 = vmul.f32 -1.442695, %v1072_v22 }
0x164b   :  { %1638 = vpow2.f32 %v1539_v13 }
0x1651   :  { %v1639_v23 = vpop.eup %1638 }
0x1652   :  { %v1076_v24 = vadd.f32 1.0, %v1639_v23 }
0x1654   :  { %1640 = vrcp.f32 %v1076_v24  ;;  %v1088_v12 = vand.u32 2147483648, %v1076_v24  ;;  %vm1082_vm14 = vweird.f32 %v1076_v24  ;;  %v1086_v15 = vand.u32 2147483647, %v1076_v24 }
0x1656   :  { %v1089_v30 = vor.u32 1.1754944e-38, %v1088_v12  ;;  %vm1087_vm1 = vcmp.eq.f32.partialorder %v1086_v15, 8.507059e+37 }
0x165a   :  { %v1641_v25 = vpop.eup %1640 }
0x165b   :  { %v1078_v14 = vmul.f32 %v1641_v25, %v1076_v24  ;;  %vm1083_vm13 = vweird.f32 %v1641_v25 }
0x165c   :  { %vm1084_vm15 = vmor %vm1082_vm14, %vm1083_vm13 }
0x165d   :  { %v1079_v26 = vsub.f32 1.0, %v1078_v14 }
0x165f   :  { %v1080_v27 = vmul.f32 %v1641_v25, %v1079_v26 }
0x1661   :  { %v1081_v28 = vadd.f32 %v1641_v25, %v1080_v27 }
0x1663   :  { %v1085_v29 = vsel %vm1084_vm15, %v1641_v25, %v1081_v28 }
0x1664   :  { %v1090_v32 = vsel %vm1087_vm1, %v1089_v30, %v1085_v29  ;;  %v1674_v30 = vld [vmem:[%s2137_s2 + $0x71] ss:$0 sm:$0xff] }
0x1665   :  { %v1103_v37 = vsub.f32 1.0, %v1090_v32  ;;  %v1109_v39 = vmul.f32 %v1090_v32, %v1043_v16  ;;  %v1183_v16 = vld [vmem:[#allocation3 + $0x28] sm:$0xff] }
0x16a1   :  { %v1094_v31 = vpop.permute.xlu2 %1093 }
0x16a2   :  { %v1096_v33 = vmul.f32 %v1094_v31, %v1090_v32  ;;  %v715_v31 = vadd.f32 %v1674_v30, %v1987_v17 }
0x16a4   :  { %1098 = vrot.lane.b32.xlu0 %v1096_v33, %s1679_s14 }
0x1716   :  { %v1099_v34 = vpop.permute.xlu0 %1098 }
0x1717   :  { %v1101_v35 = vadd.f32 %v1099_v34, %v1049_v21 }
0x1719   :  { %1642 = vtanh.f32 %v1101_v35  ;;  %v694_v35 = vld [vmem:[#allocation2 + $0x38] sm:$0xff] }
0x171f   :  { %v1643_v36 = vpop.eup %1642 }
0x1720   :  { %1105 = vrot.lane.b32.xlu1 %v1643_v36, %s1680_s15  ;;  %v717_v36 = vadd.f32 %v715_v31, %v694_v35 }
0x1792   :  { %v1106_v38 = vpop.permute.xlu1 %1105 }
0x1793   :  { %v1108_v41 = vmul.f32 %v1106_v38, %v1103_v37  ;;  %v1519_v37 = vmul.f32 -1.442695, %v717_v36 }
0x1795   :  { %v1110_v42 = vadd.f32 %v1109_v39, %v1108_v41 }
0x1797   :  { %1112 = vrot.lane.b32.xlu2 %v1110_v42, %s1680_s15 }
0x17f1   :  { %v1113_v45 = vpop.permute.xlu2 %1112 }
0x17f2   :  { %1115 = vst.msk [vmem:[#allocation5 + $0x18] sm:$0xff] %vm220_vm0, %v1113_v45  ;;  %1541 = vmatmul.msk.f32.vlgmr.msra.gmra.mxu1 %vm220_vm0, %v1113_v45 }
0x186f   :  { %v1136_v46 = vpop.f32.mrf.mxu1 }
0x1870   :  { %v1137_v47 = vadd.f32 %v1960_v20, %v1136_v46 }
0x1872   :  { %1160 = vrot.lane.b32.xlu0 %v1137_v47, %s1678_s13  ;;  %v1139_v49 = vadd.f32 %v1137_v47, %v1116_v48 }
0x1874   :  { %v1542_v50 = vmul.f32 -1.442695, %v1139_v49 }
0x1876   :  { %1644 = vpow2.f32 %v1542_v50 }
0x187c   :  { %v1645_v51 = vpop.eup %1644 }
0x187d   :  { %v1143_v52 = vadd.f32 1.0, %v1645_v51 }
0x187f   :  { %1646 = vrcp.f32 %v1143_v52  ;;  %v1155_v44 = vand.u32 2147483648, %v1143_v52  ;;  %vm1149_vm3 = vweird.f32 %v1143_v52  ;;  %v1153_v57 = vand.u32 2147483647, %v1143_v52 }
0x1881   :  { %v1156_v59 = vor.u32 1.1754944e-38, %v1155_v44  ;;  %vm1154_vm5 = vcmp.eq.f32.partialorder %v1153_v57, 8.507059e+37  ;;  %v29_v57 = vld [vmem:[%s2137_s2 + $0x68] sm:$0x3] }
0x1882   :  { %1552 = vmatpush.msk.msra.mxu1 %vm224_vm10, %v29_v57 }
0x1885   :  { %v1647_v53 = vpop.eup %1646 }
0x1886   :  { %v1145_v54 = vmul.f32 %v1647_v53, %v1143_v52  ;;  %vm1150_vm2 = vweird.f32 %v1647_v53 }
0x1887   :  { %vm1151_vm4 = vmor %vm1149_vm3, %vm1150_vm2 }
0x1888   :  { %v1146_v55 = vsub.f32 1.0, %v1145_v54 }
0x188a   :  { %v1147_v56 = vmul.f32 %v1647_v53, %v1146_v55 }
0x188c   :  { %v1148_v43 = vadd.f32 %v1647_v53, %v1147_v56 }
0x188e   :  { %v1152_v58 = vsel %vm1151_vm4, %v1647_v53, %v1148_v43 }
0x188f   :  { %v1157_v61 = vsel %vm1154_vm5, %v1156_v59, %v1152_v58  ;;  %v28_v58 = vld [vmem:[%s2137_s2 + $0x60] sm:$0xff] }
0x1890   :  { %v1170_v2 = vsub.f32 1.0, %v1157_v61  ;;  %v1176_v5 = vmul.f32 %v1157_v61, %v1110_v42  ;;  %1435 = vmatpush.msra.mxu1 %v28_v58 }
0x18e4   :  { %v1161_v60 = vpop.permute.xlu0 %1160 }
0x18e5   :  { %v1163_v62 = vmul.f32 %v1161_v60, %v1157_v61  ;;  %v1384_v60 = vld [vmem:[#allocation5] sm:$0xff]  ;;  %v1385_v61 = vld [vmem:[#allocation5 + $0x8] sm:$0xff] }
0x18e7   :  { %1165 = vrot.lane.b32.xlu1 %v1163_v62, %s1679_s14  ;;  %v1386_v62 = vld [vmem:[#allocation5 + $0x10] sm:$0xff] }
0x1959   :  { %v1166_v63 = vpop.permute.xlu1 %1165 }
0x195a   :  { %v1168_v0 = vadd.f32 %v1166_v63, %v1116_v48  ;;  %v1387_v63 = vld [vmem:[#allocation5 + $0x18] sm:$0xff] }
0x195c   :  { %1648 = vtanh.f32 %v1168_v0 }
0x1962   :  { %v1649_v1 = vpop.eup %1648 }
0x1963   :  { %1172 = vrot.lane.b32.xlu2 %v1649_v1, %s1680_s15 }
0x19bd   :  { %v1173_v3 = vpop.permute.xlu2 %1172 }
0x19be   :  { %v1175_v6 = vmul.f32 %v1173_v3, %v1170_v2 }
0x19c0   :  { %v1177_v7 = vadd.f32 %v1176_v5, %v1175_v6  ;;  %v2061_v5 = vld [vmem:[%s2137_s2 + $0x74] ss:$0 sm:$0xff] }
0x19c2   :  { %1179 = vrot.lane.b32.xlu0 %v1177_v7, %s1680_s15 }
0x1a34   :  { %v1180_v8 = vpop.permute.xlu0 %1179 }
0x1a35   :  { %1182 = vst.msk [vmem:[#allocation5 + $0x20] sm:$0xff] %vm220_vm0, %v1180_v8  ;;  %1544 = vmatmul.msk.f32.vlgmr.msrb.gmra.mxu2 %vm220_vm0, %v1180_v8 }
0x1a36   :  { %1562 = vmatpush.msk.msrb.mxu2 %vm224_vm10, %v29_v57  ;;  %vm1461_vm10 = vcmask 236544  }
0x1a38   :  { %1563 = vmatpush.msrb.mxu2 %v28_v58 }
0x1ab8   :  { %v1203_v9 = vpop.f32.mrf.mxu2 }
0x1ab9   :  { %v1204_v10 = vadd.f32 %v1960_v20, %v1203_v9 }
0x1abb   :  { %1227 = vrot.lane.b32.xlu1 %v1204_v10, %s1678_s13  ;;  %v1206_v11 = vadd.f32 %v1204_v10, %v1183_v16 }
0x1abd   :  { %v1545_v18 = vmul.f32 -1.442695, %v1206_v11 }
0x1abf   :  { %1650 = vpow2.f32 %v1545_v18 }
0x1ac5   :  { %v1651_v19 = vpop.eup %1650 }
0x1ac6   :  { %v1210_v21 = vadd.f32 1.0, %v1651_v19 }
0x1ac8   :  { %1652 = vrcp.f32 %v1210_v21  ;;  %v1222_v14 = vand.u32 2147483648, %v1210_v21  ;;  %vm1216_vm7 = vweird.f32 %v1210_v21  ;;  %v1220_v26 = vand.u32 2147483647, %v1210_v21 }
0x1aca   :  { %v1223_v28 = vor.u32 1.1754944e-38, %v1222_v14  ;;  %vm1221_vm9 = vcmp.eq.f32.partialorder %v1220_v26, 8.507059e+37 }
0x1ace   :  { %v1653_v22 = vpop.eup %1652 }
0x1acf   :  { %v1212_v13 = vmul.f32 %v1653_v22, %v1210_v21  ;;  %vm1217_vm6 = vweird.f32 %v1653_v22  ;;  %v1250_v21 = vld [vmem:[#allocation3 + $0x30] sm:$0xff] }
0x1ad0   :  { %vm1218_vm8 = vmor %vm1216_vm7, %vm1217_vm6 }
0x1ad1   :  { %v1213_v23 = vsub.f32 1.0, %v1212_v13 }
0x1ad3   :  { %v1214_v24 = vmul.f32 %v1653_v22, %v1213_v23 }
0x1ad5   :  { %v1215_v25 = vadd.f32 %v1653_v22, %v1214_v24 }
0x1ad7   :  { %v1219_v27 = vsel %vm1218_vm8, %v1653_v22, %v1215_v25 }
0x1ad8   :  { %v1224_v15 = vsel %vm1221_vm9, %v1223_v28, %v1219_v27 }
0x1ad9   :  { %v1237_v17 = vsub.f32 1.0, %v1224_v15  ;;  %v1243_v48 = vmul.f32 %v1224_v15, %v1177_v7 }
0x1b2d   :  { %v1228_v12 = vpop.permute.xlu1 %1227 }
0x1b2e   :  { %v1230_v29 = vmul.f32 %v1228_v12, %v1224_v15 }
0x1b30   :  { %1232 = vrot.lane.b32.xlu2 %v1230_v29, %s1679_s14 }
0x1b38   :  { %738 = vrot.lane.b32.xlu2 %v715_v31, %s1678_s13 }
0x1b8a   :  { %v1233_v32 = vpop.permute.xlu2 %1232 }
0x1b8b   :  { %v1235_v33 = vadd.f32 %v1233_v32, %v1183_v16 }
0x1b8d   :  { %1654 = vtanh.f32 %v1235_v33 }
0x1b8e   :  { %1656 = vpow2.f32 %v1519_v37 }
0x1b92   :  { %v739_v55 = vpop.permute.xlu2 %738 }
0x1b93   :  { %v1655_v34 = vpop.eup %1654 }
0x1b94   :  { %1239 = vrot.lane.b32.xlu0 %v1655_v34, %s1680_s15  ;;  %v1657_v38 = vpop.eup %1656 }
0x1b95   :  { %v721_v39 = vadd.f32 1.0, %v1657_v38 }
0x1b97   :  { %1658 = vrcp.f32 %v721_v39  ;;  %v733_v52 = vand.u32 2147483648, %v721_v39  ;;  %vm727_vm13 = vweird.f32 %v721_v39  ;;  %v731_v53 = vand.u32 2147483647, %v721_v39 }
0x1b99   :  { %v734_v56 = vor.u32 1.1754944e-38, %v733_v52  ;;  %vm732_vm15 = vcmp.eq.f32.partialorder %v731_v53, 8.507059e+37 }
0x1b9d   :  { %v1659_v41 = vpop.eup %1658 }
0x1b9e   :  { %v723_v42 = vmul.f32 %v1659_v41, %v721_v39  ;;  %vm728_vm12 = vweird.f32 %v1659_v41 }
0x1b9f   :  { %vm729_vm14 = vmor %vm727_vm13, %vm728_vm12 }
0x1ba0   :  { %v724_v45 = vsub.f32 1.0, %v723_v42 }
0x1ba2   :  { %v725_v46 = vmul.f32 %v1659_v41, %v724_v45 }
0x1ba4   :  { %v726_v50 = vadd.f32 %v1659_v41, %v725_v46 }
0x1ba6   :  { %v730_v54 = vsel %vm729_vm14, %v1659_v41, %v726_v50 }
0x1ba7   :  { %v2038_v43 = vsel %vm732_vm15, %v734_v56, %v730_v54  ;;  %v1388_v54 = vld [vmem:[#allocation5 + $0x20] sm:$0xff] }
0x1ba8   :  { %v741_v44 = vmul.f32 %v739_v55, %v2038_v43  ;;  %v748_v34 = vsub.f32 1.0, %v2038_v43  ;;  %v754_v36 = vmul.f32 %v2038_v43, %v1971_v4 }
0x1c06   :  { %v1240_v47 = vpop.permute.xlu0 %1239 }
0x1c07   :  { %v1242_v49 = vmul.f32 %v1240_v47, %v1237_v17 }
0x1c09   :  { %v2034_v51 = vadd.f32 %v1243_v48, %v1242_v49 }
0x1c0b   :  { %1246 = vrot.lane.b32.xlu1 %v2034_v51, %s1680_s15 }
0x1c13   :  { %743 = vrot.lane.b32.xlu1 %v741_v44, %s1679_s14 }
0x1c7d   :  { %v1247_v59 = vpop.permute.xlu1 %1246 }
0x1c7e   :  { %1249 = vst.msk [vmem:[#allocation5 + $0x28] sm:$0xff] %vm220_vm0, %v1247_v59  ;;  %1547 = vmatmul.msk.f32.vlgmr.msrb.gmra.mxu1 %vm220_vm0, %v1247_v59 }
0x1c85   :  { %v744_v0 = vpop.permute.xlu1 %743  ;;  %v1389_v55 = vld [vmem:[#allocation5 + $0x28] sm:$0xff] }
0x1c86   :  { %1553 = vmatmul.msk.f32.vlgmr.msra.gmra.mxu1 %vm220_vm0, %v1384_v60  ;;  %v746_v1 = vadd.f32 %v744_v0, %v694_v35 }
0x1c88   :  { %1660 = vtanh.f32 %v746_v1 }
0x1c8e   :  { %1554 = vmatmul.msk.f32.gmra.mxu1 %vm220_vm0, %v1385_v61  ;;  %v1661_v8 = vpop.eup %1660 }
0x1c96   :  { %1555 = vmatmul.msk.f32.gmra.mxu1 %vm220_vm0, %v1386_v62 }
0x1c9e   :  { %1556 = vmatmul.msk.f32.gmra.mxu1 %vm220_vm0, %v1387_v63 }
0x1cfb   :  { %v1270_v2 = vpop.f32.mrf.mxu1 }
0x1cfc   :  { %v1271_v3 = vadd.f32 %v1960_v20, %v1270_v2 }
0x1cfe   :  { %1294 = vrot.lane.b32.xlu0 %v1271_v3, %s1678_s13  ;;  %v1273_v22 = vadd.f32 %v1271_v3, %v1250_v21 }
0x1d00   :  { %v1548_v13 = vmul.f32 -1.442695, %v1273_v22 }
0x1d02   :  { %1662 = vpow2.f32 %v1548_v13 }
0x1d03   :  { %v1437_v6 = vpop.f32.mrf.mxu1 }
0x1d04   :  { %v1438_v7 = vadd.f32 %v2061_v5, %v1437_v6 }
0x1d06   :  { %1462 = vst.msk [vmem:[%s2139_s3] sm:$0xff] %vm1461_vm10, %v1438_v7  ;;  %750 = vrot.lane.b32.xlu0 %v1661_v8, %s1680_s15 }
0x1d08   :  { %v1663_v23 = vpop.eup %1662 }
0x1d09   :  { %v1277_v24 = vadd.f32 1.0, %v1663_v23 }
0x1d0b   :  { %v1440_v9 = vpop.f32.mrf.mxu1  ;;  %1664 = vrcp.f32 %v1277_v24  ;;  %v1289_v12 = vand.u32 2147483648, %v1277_v24  ;;  %vm1283_vm2 = vweird.f32 %v1277_v24  ;;  %v1287_v15 = vand.u32 2147483647, %v1277_v24 }
0x1d0c   :  { %v1441_v10 = vadd.f32 %v2061_v5, %v1440_v9 }
0x1d0d   :  { %v1290_v30 = vor.u32 1.1754944e-38, %v1289_v12  ;;  %vm1288_vm4 = vcmp.eq.f32.partialorder %v1287_v15, 8.507059e+37 }
0x1d0e   :  { %1463 = vst.msk [vmem:[%s2139_s3 + $0x8] sm:$0xff] %vm1461_vm10, %v1441_v10 }
0x1d11   :  { %v1665_v25 = vpop.eup %1664 }
0x1d12   :  { %v1279_v14 = vmul.f32 %v1665_v25, %v1277_v24  ;;  %vm1284_vm1 = vweird.f32 %v1665_v25 }
0x1d13   :  { %v1443_v16 = vpop.f32.mrf.mxu1  ;;  %vm1285_vm3 = vmor %vm1283_vm2, %vm1284_vm1 }
0x1d14   :  { %v1444_v11 = vadd.f32 %v2061_v5, %v1443_v16  ;;  %v1280_v26 = vsub.f32 1.0, %v1279_v14 }
0x1d16   :  { %1464 = vst.msk [vmem:[%s2139_s3 + $0x10] sm:$0xff] %vm1461_vm10, %v1444_v11  ;;  %v1281_v27 = vmul.f32 %v1665_v25, %v1280_v26 }
0x1d18   :  { %v1282_v28 = vadd.f32 %v1665_v25, %v1281_v27 }
0x1d1a   :  { %v1286_v29 = vsel %vm1285_vm3, %v1665_v25, %v1282_v28 }
0x1d1b   :  { %v1446_v18 = vpop.f32.mrf.mxu1  ;;  %v1291_v32 = vsel %vm1288_vm4, %v1290_v30, %v1286_v29 }
0x1d1c   :  { %v1447_v19 = vadd.f32 %v2061_v5, %v1446_v18  ;;  %v1304_v4 = vsub.f32 1.0, %v1291_v32  ;;  %v1310_v47 = vmul.f32 %v1291_v32, %v2034_v51 }
0x1d1e   :  { %1465 = vst.msk [vmem:[%s2139_s3 + $0x18] sm:$0xff] %vm1461_vm10, %v1447_v19 }
0x1d70   :  { %v1295_v31 = vpop.permute.xlu0 %1294 }
0x1d71   :  { %v1297_v33 = vmul.f32 %v1295_v31, %v1291_v32 }
0x1d73   :  { %1299 = vrot.lane.b32.xlu2 %v1297_v33, %s1679_s14 }
0x1d78   :  { %v751_v35 = vpop.permute.xlu0 %750 }
0x1d79   :  { %v753_v37 = vmul.f32 %v751_v35, %v748_v34 }
0x1d7b   :  { %v755_v38 = vadd.f32 %v754_v36, %v753_v37 }
0x1d7d   :  { %757 = vrot.lane.b32.xlu2 %v755_v38, %s1680_s15 }
0x1dcd   :  { %v1300_v39 = vpop.permute.xlu2 %1299 }
0x1dce   :  { %v1302_v41 = vadd.f32 %v1300_v39, %v1250_v21 }
0x1dd0   :  { %1666 = vtanh.f32 %v1302_v41 }
0x1dd6   :  { %v1667_v42 = vpop.eup %1666 }
0x1dd7   :  { %1306 = vrot.lane.b32.xlu1 %v1667_v42, %s1680_s15  ;;  %v758_v45 = vpop.permute.xlu2 %757 }
0x1dd8   :  { %760 = vst.msk [vmem:[#allocation4 + $0x38] sm:$0xff] %vm220_vm0, %v758_v45 }
0x1dd9   :  { %1470 = vst.msk [vmem:[%s2140_s4] sm:$0xff] %vm220_vm0, %v758_v45 }
0x1ddf   :  { %v768_v46 = vld [vmem:[#allocation4 + $0x38] sm:$0xff] }
0x1de0   :  { %1528 = vmatmul.msk.f32.gmra.mxu3 %vm220_vm0, %v768_v46 }
0x1e49   :  { %v1307_v17 = vpop.permute.xlu1 %1306 }
0x1e4a   :  { %v1309_v48 = vmul.f32 %v1307_v17, %v1304_v4 }
0x1e4c   :  { %v1311_v49 = vadd.f32 %v1310_v47, %v1309_v48 }
0x1e4e   :  { %1313 = vrot.lane.b32.xlu0 %v1311_v49, %s1680_s15 }
0x1e63   :  { %v835_v50 = vpop.f32.mrf.mxu3 }
0x1e64   :  { %v836_v52 = vadd.f32 %v1910_v40, %v835_v50 }
0x1e66   :  { %845 = vst.msk [vmem:[#allocation3 + $0x38] sm:$0xff] %vm209_vm11, %v836_v52 }
0x1e6d   :  { %v1317_v60 = vld [vmem:[#allocation3 + $0x38] sm:$0xff] }
0x1ec0   :  { %v1314_v53 = vpop.permute.xlu0 %1313 }
0x1ec1   :  { %1316 = vst.msk [vmem:[#allocation5 + $0x30] sm:$0xff] %vm220_vm0, %v1314_v53  ;;  %1550 = vmatmul.msk.f32.vlgmr.msra.gmra.mxu2 %vm220_vm0, %v1314_v53 }
0x1ec8   :  { %v1390_v51 = vld [vmem:[#allocation5 + $0x30] sm:$0xff] }
0x1ec9   :  { %1557 = vmatmul.msk.f32.vlgmr.msrb.gmra.mxu2 %vm220_vm0, %v1388_v54 }
0x1ed1   :  { %1558 = vmatmul.msk.f32.gmra.mxu2 %vm220_vm0, %v1389_v55 }
0x1ed9   :  { %1559 = vmatmul.msk.f32.gmra.mxu2 %vm220_vm0, %v1390_v51 }
0x1f44   :  { %v1337_v56 = vpop.f32.mrf.mxu2 }
0x1f45   :  { %v1338_v43 = vadd.f32 %v1960_v20, %v1337_v56 }
0x1f47   :  { %1361 = vrot.lane.b32.xlu1 %v1338_v43, %s1678_s13  ;;  %v1340_v61 = vadd.f32 %v1338_v43, %v1317_v60 }
0x1f49   :  { %v1551_v62 = vmul.f32 -1.442695, %v1340_v61 }
0x1f4b   :  { %1668 = vpow2.f32 %v1551_v62 }
0x1f4c   :  { %v1449_v40 = vpop.f32.mrf.mxu2 }
0x1f4d   :  { %v1450_v44 = vadd.f32 %v2061_v5, %v1449_v40 }
0x1f4f   :  { %1466 = vst.msk [vmem:[%s2139_s3 + $0x20] sm:$0xff] %vm1461_vm10, %v1450_v44 }
0x1f51   :  { %v1669_v63 = vpop.eup %1668 }
0x1f52   :  { %v1344_v0 = vadd.f32 1.0, %v1669_v63 }
0x1f54   :  { %v1452_v57 = vpop.f32.mrf.mxu2  ;;  %1670 = vrcp.f32 %v1344_v0  ;;  %v1356_v8 = vand.u32 2147483648, %v1344_v0  ;;  %vm1350_vm5 = vweird.f32 %v1344_v0  ;;  %v1354_v9 = vand.u32 2147483647, %v1344_v0 }
0x1f55   :  { %v1453_v58 = vadd.f32 %v2061_v5, %v1452_v57 }
0x1f56   :  { %v1357_v16 = vor.u32 1.1754944e-38, %v1356_v8  ;;  %vm1355_vm7 = vcmp.eq.f32.partialorder %v1354_v9, 8.507059e+37 }
0x1f57   :  { %1467 = vst.msk [vmem:[%s2139_s3 + $0x28] sm:$0xff] %vm1461_vm10, %v1453_v58 }
0x1f5a   :  { %v1671_v1 = vpop.eup %1670 }
0x1f5b   :  { %v1346_v2 = vmul.f32 %v1671_v1, %v1344_v0  ;;  %vm1351_vm11 = vweird.f32 %v1671_v1 }
0x1f5c   :  { %v1455_v59 = vpop.f32.mrf.mxu2  ;;  %vm1352_vm6 = vmor %vm1350_vm5, %vm1351_vm11 }
0x1f5d   :  { %v1456_v20 = vadd.f32 %v2061_v5, %v1455_v59  ;;  %v1347_v3 = vsub.f32 1.0, %v1346_v2 }
0x1f5f   :  { %1468 = vst.msk [vmem:[%s2139_s3 + $0x30] sm:$0xff] %vm1461_vm10, %v1456_v20  ;;  %v1348_v6 = vmul.f32 %v1671_v1, %v1347_v3 }
0x1f61   :  { %v1349_v7 = vadd.f32 %v1671_v1, %v1348_v6 }
0x1f63   :  { %v1353_v10 = vsel %vm1352_vm6, %v1671_v1, %v1349_v7 }
0x1f64   :  { %v1358_v18 = vsel %vm1355_vm7, %v1357_v16, %v1353_v10 }
0x1f65   :  { %v1371_v23 = vsub.f32 1.0, %v1358_v18  ;;  %v1377_v25 = vmul.f32 %v1358_v18, %v1311_v49 }
0x1fb9   :  { %v1362_v11 = vpop.permute.xlu1 %1361 }
0x1fba   :  { %v1364_v19 = vmul.f32 %v1362_v11, %v1358_v18 }
0x1fbc   :  { %1366 = vrot.lane.b32.xlu2 %v1364_v19, %s1679_s14 }
0x2016   :  { %v1367_v21 = vpop.permute.xlu2 %1366 }
0x2017   :  { %v1369_v22 = vadd.f32 %v1367_v21, %v1317_v60 }
0x2019   :  { %1672 = vtanh.f32 %v1369_v22 }
0x201f   :  { %v1673_v13 = vpop.eup %1672 }
0x2020   :  { %1373 = vrot.lane.b32.xlu0 %v1673_v13, %s1680_s15 }
0x2092   :  { %v1374_v24 = vpop.permute.xlu0 %1373 }
0x2093   :  { %v1376_v14 = vmul.f32 %v1374_v24, %v1371_v23 }
0x2095   :  { %v1378_v26 = vadd.f32 %v1377_v25, %v1376_v14 }
0x2097   :  { %1380 = vrot.lane.b32.xlu1 %v1378_v26, %s1680_s15 }
0x2109   :  { %v1381_v27 = vpop.permute.xlu1 %1380 }
0x210a   :  { %1383 = vst.msk [vmem:[#allocation5 + $0x38] sm:$0xff] %vm220_vm0, %v1381_v27 }
0x210b   :  { %1561 = vst.msk [vmem:[%s2140_s4 + $0x8] sm:$0xff] %vm220_vm0, %v1381_v27 }
0x2111   :  { %v1391_v28 = vld [vmem:[#allocation5 + $0x38] sm:$0xff] }
0x2112   :  { %1560 = vmatmul.msk.f32.gmra.mxu2 %vm220_vm0, %v1391_v28 }
0x2195   :  { %v1458_v12 = vpop.f32.mrf.mxu2 }
0x2196   :  { %v1459_v15 = vadd.f32 %v2061_v5, %v1458_v12 }
0x2198   :  { %1469 = vst.msk [vmem:[%s2139_s3 + $0x38] sm:$0xff] %vm1461_vm10, %v1459_v15 }

</bundles_post_ra>
